<compile_context>
chip_gen: v7x
topology: tpu7x:2x2x1
jax: 0.10.0
libtpu: 0.0.40
codegen_flags: <defaults>
</compile_context>

<pallas_src>
import functools
import math

import jax
import jax.numpy as jnp
from jax.experimental import pallas as pl
from jax.experimental.pallas import tpu as pltpu


LN_EPS = 1e-5


def _layernorm(x, gamma, beta, eps=LN_EPS):
    mean = jnp.mean(x, axis=-1, keepdims=True)
    xc = x - mean
    var = jnp.mean(xc * xc, axis=-1, keepdims=True)
    inv = jax.lax.rsqrt(var + eps)
    return xc * inv * gamma + beta


def _unpack_vecd(vecd):
    # (9, D): bq, bk, bv, bo, b3, ff_norm_g, ff_norm_b, enc_norm_g, enc_norm_b
    return (vecd[0:1], vecd[1:2], vecd[2:3], vecd[3:4], vecd[4:5],
            vecd[5:6], vecd[6:7], vecd[7:8], vecd[8:9])


def _unpack_vech(vech):
    # (6, H): b1, ln1_g, ln1_b, b2, ln2_g, ln2_b
    return (vech[0:1], vech[1:2], vech[2:3], vech[3:4], vech[4:5], vech[5:6])


def encoder_kernel(
    x_ref,
    wqkv_ref, wo_ref,
    w1_ref, w2_ref, w3_ref,
    vecd_ref, vech_ref,
    o_ref,
    *, num_heads, d_k, d_model,
):
    x = x_ref[0]                       # (S, D) f32 for this batch element
    D = d_model

    bq, bk, bv, bo, b3, ffn_g, ffn_b, enc_g, enc_b = _unpack_vecd(vecd_ref[...])
    b1, ln1_g, ln1_b, b2, ln2_g, ln2_b = _unpack_vech(vech_ref[...])

    # ---- multi-head self-attention (torch module ignores key/value args) ----
    # Fused QKV projection: one (S, D) x (D, 3D) matmul.
    qkv = jnp.dot(x, wqkv_ref[...], preferred_element_type=jnp.float32)  # (S, 3D)
    inv_sqrt_dk = 1.0 / math.sqrt(d_k)
    q = (qkv[:, 0:D] + bq) * inv_sqrt_dk      # fold softmax scale into Q
    k = qkv[:, D:2 * D] + bk
    v = qkv[:, 2 * D:3 * D] + bv

    attn = None
    for h in range(num_heads):                       # static unroll over heads
        sl = slice(h * d_k, (h + 1) * d_k)
        qh = q[:, sl]                                # (S, d_k)
        kh = k[:, sl]
        vh = v[:, sl]
        # Q @ K^T without an explicit transpose (contract last dims).
        scores = jax.lax.dot_general(
            qh, kh, (((1,), (1,)), ((), ())),
            preferred_element_type=jnp.float32)                   # (S, S)
        m = jnp.max(scores, axis=-1, keepdims=True)
        e = jnp.exp(scores - m)
        w = e / jnp.sum(e, axis=-1, keepdims=True)
        oh = jnp.dot(w, vh, preferred_element_type=jnp.float32)   # (S, d_k)
        # concat-of-heads @ Wo == sum_h  oh @ Wo[h*d_k:(h+1)*d_k, :]
        part = jnp.dot(oh, wo_ref[sl, :], preferred_element_type=jnp.float32)
        attn = part if attn is None else attn + part
    attn = attn + bo                                 # (S, D)

    # ---- feed-forward block (dropout = identity in eval) ----
    h1 = jnp.dot(attn, w1_ref[...], preferred_element_type=jnp.float32) + b1
    h1 = jnp.maximum(_layernorm(h1, ln1_g, ln1_b), 0.0)
    h2 = jnp.dot(h1, w2_ref[...], preferred_element_type=jnp.float32) + b2
    h2 = jnp.maximum(_layernorm(h2, ln2_g, ln2_b), 0.0)
    h3 = jnp.dot(h2, w3_ref[...], preferred_element_type=jnp.float32) + b3
    ff = _layernorm(h3 + attn, ffn_g, ffn_b)         # residual inside FF

    # ---- final encoder LayerNorm ----
    out = _layernorm(ff, enc_g, enc_b)
    o_ref[0] = out.astype(o_ref.dtype)


@functools.partial(jax.jit, static_argnames=("num_heads",))
def encoder_forward(x, params, *, num_heads):
    (wqkv, wo, w1, w2, w3, vecd, vech) = params
    B, S, D = x.shape
    d_k = D // num_heads

    kernel = functools.partial(encoder_kernel, num_heads=num_heads,
                               d_k=d_k, d_model=D)

    # Weights / packed vectors: constant index_map -> VMEM-resident across the
    # batch grid (no re-DMA per step).
    const = lambda a: pl.BlockSpec(a.shape, lambda b: (0, 0))

    return pl.pallas_call(
        kernel,
        out_shape=jax.ShapeDtypeStruct((B, S, D), x.dtype),
        grid=(B,),
        in_specs=[
            pl.BlockSpec((1, S, D), lambda b: (b, 0, 0)),       # activations
            const(wqkv), const(wo),
            const(w1), const(w2), const(w3),
            const(vecd), const(vech),
        ],
        out_specs=pl.BlockSpec((1, S, D), lambda b: (b, 0, 0)),
        compiler_params=pltpu.CompilerParams(
            dimension_semantics=("parallel",)),                 # megacore on v7x
    )(x, wqkv, wo, w1, w2, w3, vecd, vech)


def init_params(key, dim_model, num_heads, scale):
    D = dim_model
    H = dim_model // scale
    ks = jax.random.split(key, 20)

    def lin(kw, kb, din, dout):
        s = 1.0 / jnp.sqrt(din)
        w = jax.random.uniform(kw, (din, dout), jnp.float32, -s, s)
        b = jax.random.uniform(kb, (1, dout), jnp.float32, -s, s)
        return w, b

    wq, bq = lin(ks[0], ks[1], D, D)
    wk, bk = lin(ks[2], ks[3], D, D)
    wv, bv = lin(ks[4], ks[5], D, D)
    wo, bo = lin(ks[6], ks[7], D, D)
    w1, b1 = lin(ks[8], ks[9], D, H)
    w2, b2 = lin(ks[10], ks[11], H, H)
    w3, b3 = lin(ks[12], ks[13], H, D)

    # Non-trivial LN affine params so the test exercises every gamma/beta.
    def ln(kg, kb, d):
        g = jax.random.uniform(kg, (1, d), jnp.float32, 0.5, 1.5)
        b = jax.random.uniform(kb, (1, d), jnp.float32, -0.5, 0.5)
        return g, b

    ln1_g, ln1_b = ln(ks[14], ks[15], H)
    ln2_g, ln2_b = ln(ks[16], ks[17], H)
    ffn_g, ffn_b = ln(ks[18], ks[19], D)
    enc_g = jnp.ones((1, D), jnp.float32)
    enc_b = jnp.zeros((1, D), jnp.float32)

    # Fuse the three projection weights into one matmul operand (done once,
    # outside the kernel) and pack the small vectors into two arrays.
    wqkv = jnp.concatenate([wq, wk, wv], axis=1)                    # (D, 3D)
    vecd = jnp.concatenate(
        [bq, bk, bv, bo, b3, ffn_g, ffn_b, enc_g, enc_b], axis=0)   # (9, D)
    vech = jnp.concatenate(
        [b1, ln1_g, ln1_b, b2, ln2_g, ln2_b], axis=0)               # (6, H)
    return (wqkv, wo, w1, w2, w3, vecd, vech)


def reference_forward(x, params, *, num_heads):
    (wqkv, wo, w1, w2, w3, vecd, vech) = params
    bq, bk, bv, bo, b3, ffn_g, ffn_b, enc_g, enc_b = _unpack_vecd(vecd)
    b1, ln1_g, ln1_b, b2, ln2_g, ln2_b = _unpack_vech(vech)

    B, S, D = x.shape
    d_k = D // num_heads
    wq, wk, wv = wqkv[:, 0:D], wqkv[:, D:2 * D], wqkv[:, 2 * D:3 * D]

    q = x @ wq + bq
    k = x @ wk + bk
    v = x @ wv + bv

    def split(t):
        return t.reshape(B, S, num_heads, d_k).transpose(0, 2, 1, 3)

    qh, kh, vh = split(q), split(k), split(v)
    scores = jnp.einsum("bhqd,bhkd->bhqk", qh, kh) * (1.0 / math.sqrt(d_k))
    w = jax.nn.softmax(scores, axis=-1)
    oh = jnp.einsum("bhqk,bhkd->bhqd", w, vh)
    o = oh.transpose(0, 2, 1, 3).reshape(B, S, D)
    attn = o @ wo + bo

    h1 = jnp.maximum(_layernorm(attn @ w1 + b1, ln1_g, ln1_b), 0.0)
    h2 = jnp.maximum(_layernorm(h1 @ w2 + b2, ln2_g, ln2_b), 0.0)
    h3 = h2 @ w3 + b3
    ff = _layernorm(h3 + attn, ffn_g, ffn_b)
    return _layernorm(ff, enc_g, enc_b)


if __name__ == "__main__":
    DIM_MODEL = 32
    N_HEADS = 4
    SCALE = 1
    BATCH = 2
    SEQ = 16

    key = jax.random.PRNGKey(0)
    kx, kp = jax.random.split(key)
    x = jax.random.normal(kx, (BATCH, SEQ, DIM_MODEL), jnp.float32)
    params = init_params(kp, DIM_MODEL, N_HEADS, SCALE)

    out = encoder_forward(x, params, num_heads=N_HEADS)
    out = jax.block_until_ready(out)

    ref = reference_forward(x, params, num_heads=N_HEADS)
    assert out.shape == (BATCH, SEQ, DIM_MODEL)
    assert jnp.allclose(out, ref, atol=1e-4, rtol=1e-4), "mismatch vs reference"

    print("KERNEL_OK")
</pallas_src>

<mosaic_0001>
module attributes {stable_mosaic.version = 11 : i64} {
  func.func @encoder_kernel(%arg0: i32, %arg1: memref<1x16x32xf32, #tpu.memory_space<vmem>>, %arg2: memref<32x96xf32, #tpu.memory_space<vmem>>, %arg3: memref<32x32xf32, #tpu.memory_space<vmem>>, %arg4: memref<32x32xf32, #tpu.memory_space<vmem>>, %arg5: memref<32x32xf32, #tpu.memory_space<vmem>>, %arg6: memref<32x32xf32, #tpu.memory_space<vmem>>, %arg7: memref<9x32xf32, #tpu.memory_space<vmem>>, %arg8: memref<6x32xf32, #tpu.memory_space<vmem>>, %arg9: memref<1x16x32xf32, #tpu.memory_space<vmem>>) attributes {dimension_semantics = [#tpu.dimension_semantics<parallel>], iteration_bounds = array<i64: 2>, scalar_prefetch = 0 : i64, scratch_operands = 0 : i64, tpu.core_type = #tpu.core_type<tc>, window_params = [{transform_indices = @transform_0, window_bounds = array<i64: 1, 16, 32>}, {pipeline_mode = #tpu.pipeline_mode<synchronous>, transform_indices = @transform_1, window_bounds = array<i64: 32, 96>}, {pipeline_mode = #tpu.pipeline_mode<synchronous>, transform_indices = @transform_2, window_bounds = array<i64: 32, 32>}, {pipeline_mode = #tpu.pipeline_mode<synchronous>, transform_indices = @transform_3, window_bounds = array<i64: 32, 32>}, {pipeline_mode = #tpu.pipeline_mode<synchronous>, transform_indices = @transform_4, window_bounds = array<i64: 32, 32>}, {pipeline_mode = #tpu.pipeline_mode<synchronous>, transform_indices = @transform_5, window_bounds = array<i64: 32, 32>}, {pipeline_mode = #tpu.pipeline_mode<synchronous>, transform_indices = @transform_6, window_bounds = array<i64: 9, 32>}, {pipeline_mode = #tpu.pipeline_mode<synchronous>, transform_indices = @transform_7, window_bounds = array<i64: 6, 32>}, {transform_indices = @transform_8, window_bounds = array<i64: 1, 16, 32>}]} {
    %c0 = arith.constant 0 : index
    %c0_0 = arith.constant 0 : index
    %c0_1 = arith.constant 0 : index
    %0 = vector.load %arg1[%c0, %c0_0, %c0_1] : memref<1x16x32xf32, #tpu.memory_space<vmem>>, vector<1x16x32xf32>
    %1 = vector.shape_cast %0 : vector<1x16x32xf32> to vector<16x32xf32>
    %c0_2 = arith.constant 0 : index
    %c0_3 = arith.constant 0 : index
    %2 = vector.load %arg7[%c0_2, %c0_3] : memref<9x32xf32, #tpu.memory_space<vmem>>, vector<9x32xf32>
    %3 = vector.extract_strided_slice %2 {offsets = [0, 0], sizes = [1, 32], strides = [1, 1]} : vector<9x32xf32> to vector<1x32xf32>
    %4 = vector.extract_strided_slice %2 {offsets = [1, 0], sizes = [1, 32], strides = [1, 1]} : vector<9x32xf32> to vector<1x32xf32>
    %5 = vector.extract_strided_slice %2 {offsets = [2, 0], sizes = [1, 32], strides = [1, 1]} : vector<9x32xf32> to vector<1x32xf32>
    %6 = vector.extract_strided_slice %2 {offsets = [3, 0], sizes = [1, 32], strides = [1, 1]} : vector<9x32xf32> to vector<1x32xf32>
    %7 = vector.extract_strided_slice %2 {offsets = [4, 0], sizes = [1, 32], strides = [1, 1]} : vector<9x32xf32> to vector<1x32xf32>
    %8 = vector.extract_strided_slice %2 {offsets = [5, 0], sizes = [1, 32], strides = [1, 1]} : vector<9x32xf32> to vector<1x32xf32>
    %9 = vector.extract_strided_slice %2 {offsets = [6, 0], sizes = [1, 32], strides = [1, 1]} : vector<9x32xf32> to vector<1x32xf32>
    %10 = vector.extract_strided_slice %2 {offsets = [7, 0], sizes = [1, 32], strides = [1, 1]} : vector<9x32xf32> to vector<1x32xf32>
    %11 = vector.extract_strided_slice %2 {offsets = [8, 0], sizes = [1, 32], strides = [1, 1]} : vector<9x32xf32> to vector<1x32xf32>
    %c0_4 = arith.constant 0 : index
    %c0_5 = arith.constant 0 : index
    %12 = vector.load %arg8[%c0_4, %c0_5] : memref<6x32xf32, #tpu.memory_space<vmem>>, vector<6x32xf32>
    %13 = vector.extract_strided_slice %12 {offsets = [0, 0], sizes = [1, 32], strides = [1, 1]} : vector<6x32xf32> to vector<1x32xf32>
    %14 = vector.extract_strided_slice %12 {offsets = [1, 0], sizes = [1, 32], strides = [1, 1]} : vector<6x32xf32> to vector<1x32xf32>
    %15 = vector.extract_strided_slice %12 {offsets = [2, 0], sizes = [1, 32], strides = [1, 1]} : vector<6x32xf32> to vector<1x32xf32>
    %16 = vector.extract_strided_slice %12 {offsets = [3, 0], sizes = [1, 32], strides = [1, 1]} : vector<6x32xf32> to vector<1x32xf32>
    %17 = vector.extract_strided_slice %12 {offsets = [4, 0], sizes = [1, 32], strides = [1, 1]} : vector<6x32xf32> to vector<1x32xf32>
    %18 = vector.extract_strided_slice %12 {offsets = [5, 0], sizes = [1, 32], strides = [1, 1]} : vector<6x32xf32> to vector<1x32xf32>
    %c0_6 = arith.constant 0 : index
    %c0_7 = arith.constant 0 : index
    %19 = vector.load %arg2[%c0_6, %c0_7] : memref<32x96xf32, #tpu.memory_space<vmem>>, vector<32x96xf32>
    %cst = arith.constant dense<0.000000e+00> : vector<16x96xf32>
    %20 = tpu.matmul %1, %19, %cst {dimension_numbers = #tpu.dot_dimension_numbers<[1], [0], [0], [1], [0, 0, 1, 1], [], []>} : vector<16x32xf32>, vector<32x96xf32>, vector<16x96xf32> -> vector<16x96xf32>
    %21 = vector.extract_strided_slice %20 {offsets = [0, 0], sizes = [16, 32], strides = [1, 1]} : vector<16x96xf32> to vector<16x32xf32>
    %22 = vector.broadcast %3 : vector<1x32xf32> to vector<16x32xf32>
    %23 = arith.addf %21, %22 : vector<16x32xf32>
    %cst_8 = arith.constant 0.353553385 : f32
    %24 = vector.broadcast %cst_8 : f32 to vector<16x32xf32>
    %25 = arith.mulf %23, %24 : vector<16x32xf32>
    %26 = vector.extract_strided_slice %20 {offsets = [0, 32], sizes = [16, 32], strides = [1, 1]} : vector<16x96xf32> to vector<16x32xf32>
    %27 = vector.broadcast %4 : vector<1x32xf32> to vector<16x32xf32>
    %28 = arith.addf %26, %27 : vector<16x32xf32>
    %29 = vector.extract_strided_slice %20 {offsets = [0, 64], sizes = [16, 32], strides = [1, 1]} : vector<16x96xf32> to vector<16x32xf32>
    %30 = vector.broadcast %5 : vector<1x32xf32> to vector<16x32xf32>
    %31 = arith.addf %29, %30 : vector<16x32xf32>
    %32 = vector.extract_strided_slice %25 {offsets = [0, 0], sizes = [16, 8], strides = [1, 1]} : vector<16x32xf32> to vector<16x8xf32>
    %33 = vector.extract_strided_slice %28 {offsets = [0, 0], sizes = [16, 8], strides = [1, 1]} : vector<16x32xf32> to vector<16x8xf32>
    %34 = vector.extract_strided_slice %31 {offsets = [0, 0], sizes = [16, 8], strides = [1, 1]} : vector<16x32xf32> to vector<16x8xf32>
    %cst_9 = arith.constant dense<0.000000e+00> : vector<16x16xf32>
    %35 = tpu.matmul %32, %33, %cst_9 {dimension_numbers = #tpu.dot_dimension_numbers<[1], [1], [0], [0], [0, 0, 1, 0], [], []>} : vector<16x8xf32>, vector<16x8xf32>, vector<16x16xf32> -> vector<16x16xf32>
    %cst_10 = arith.constant dense<0xFF800000> : vector<16xf32>
    %36 = vector.multi_reduction <maximumf>, %35, %cst_10 [1] : vector<16x16xf32> to vector<16xf32>
    %37 = vector.shape_cast %36 : vector<16xf32> to vector<16x1xf32>
    %38 = vector.broadcast %37 : vector<16x1xf32> to vector<16x16xf32>
    %39 = arith.subf %35, %38 : vector<16x16xf32>
    %40 = math.exp %39 : vector<16x16xf32>
    %cst_11 = arith.constant dense<0.000000e+00> : vector<16xf32>
    %41 = vector.multi_reduction <add>, %40, %cst_11 [1] : vector<16x16xf32> to vector<16xf32>
    %42 = vector.shape_cast %41 : vector<16xf32> to vector<16x1xf32>
    %43 = vector.broadcast %42 : vector<16x1xf32> to vector<16x16xf32>
    %44 = arith.divf %40, %43 : vector<16x16xf32>
    %cst_12 = arith.constant dense<0.000000e+00> : vector<16x8xf32>
    %45 = tpu.matmul %44, %34, %cst_12 {dimension_numbers = #tpu.dot_dimension_numbers<[1], [0], [0], [1], [0, 0, 1, 1], [], []>} : vector<16x16xf32>, vector<16x8xf32>, vector<16x8xf32> -> vector<16x8xf32>
    %c0_13 = arith.constant 0 : index
    %c0_14 = arith.constant 0 : index
    %46 = vector.load %arg3[%c0_13, %c0_14] : memref<32x32xf32, #tpu.memory_space<vmem>>, vector<8x32xf32>
    %cst_15 = arith.constant dense<0.000000e+00> : vector<16x32xf32>
    %47 = tpu.matmul %45, %46, %cst_15 {dimension_numbers = #tpu.dot_dimension_numbers<[1], [0], [0], [1], [0, 0, 1, 1], [], []>} : vector<16x8xf32>, vector<8x32xf32>, vector<16x32xf32> -> vector<16x32xf32>
    %48 = vector.extract_strided_slice %25 {offsets = [0, 8], sizes = [16, 8], strides = [1, 1]} : vector<16x32xf32> to vector<16x8xf32>
    %49 = vector.extract_strided_slice %28 {offsets = [0, 8], sizes = [16, 8], strides = [1, 1]} : vector<16x32xf32> to vector<16x8xf32>
    %50 = vector.extract_strided_slice %31 {offsets = [0, 8], sizes = [16, 8], strides = [1, 1]} : vector<16x32xf32> to vector<16x8xf32>
    %cst_16 = arith.constant dense<0.000000e+00> : vector<16x16xf32>
    %51 = tpu.matmul %48, %49, %cst_16 {dimension_numbers = #tpu.dot_dimension_numbers<[1], [1], [0], [0], [0, 0, 1, 0], [], []>} : vector<16x8xf32>, vector<16x8xf32>, vector<16x16xf32> -> vector<16x16xf32>
    %cst_17 = arith.constant dense<0xFF800000> : vector<16xf32>
    %52 = vector.multi_reduction <maximumf>, %51, %cst_17 [1] : vector<16x16xf32> to vector<16xf32>
    %53 = vector.shape_cast %52 : vector<16xf32> to vector<16x1xf32>
    %54 = vector.broadcast %53 : vector<16x1xf32> to vector<16x16xf32>
    %55 = arith.subf %51, %54 : vector<16x16xf32>
    %56 = math.exp %55 : vector<16x16xf32>
    %cst_18 = arith.constant dense<0.000000e+00> : vector<16xf32>
    %57 = vector.multi_reduction <add>, %56, %cst_18 [1] : vector<16x16xf32> to vector<16xf32>
    %58 = vector.shape_cast %57 : vector<16xf32> to vector<16x1xf32>
    %59 = vector.broadcast %58 : vector<16x1xf32> to vector<16x16xf32>
    %60 = arith.divf %56, %59 : vector<16x16xf32>
    %cst_19 = arith.constant dense<0.000000e+00> : vector<16x8xf32>
    %61 = tpu.matmul %60, %50, %cst_19 {dimension_numbers = #tpu.dot_dimension_numbers<[1], [0], [0], [1], [0, 0, 1, 1], [], []>} : vector<16x16xf32>, vector<16x8xf32>, vector<16x8xf32> -> vector<16x8xf32>
    %c8 = arith.constant 8 : index
    %c0_20 = arith.constant 0 : index
    %62 = vector.load %arg3[%c8, %c0_20] : memref<32x32xf32, #tpu.memory_space<vmem>>, vector<8x32xf32>
    %cst_21 = arith.constant dense<0.000000e+00> : vector<16x32xf32>
    %63 = tpu.matmul %61, %62, %cst_21 {dimension_numbers = #tpu.dot_dimension_numbers<[1], [0], [0], [1], [0, 0, 1, 1], [], []>} : vector<16x8xf32>, vector<8x32xf32>, vector<16x32xf32> -> vector<16x32xf32>
    %64 = arith.addf %47, %63 : vector<16x32xf32>
    %65 = vector.extract_strided_slice %25 {offsets = [0, 16], sizes = [16, 8], strides = [1, 1]} : vector<16x32xf32> to vector<16x8xf32>
    %66 = vector.extract_strided_slice %28 {offsets = [0, 16], sizes = [16, 8], strides = [1, 1]} : vector<16x32xf32> to vector<16x8xf32>
    %67 = vector.extract_strided_slice %31 {offsets = [0, 16], sizes = [16, 8], strides = [1, 1]} : vector<16x32xf32> to vector<16x8xf32>
    %cst_22 = arith.constant dense<0.000000e+00> : vector<16x16xf32>
    %68 = tpu.matmul %65, %66, %cst_22 {dimension_numbers = #tpu.dot_dimension_numbers<[1], [1], [0], [0], [0, 0, 1, 0], [], []>} : vector<16x8xf32>, vector<16x8xf32>, vector<16x16xf32> -> vector<16x16xf32>
    %cst_23 = arith.constant dense<0xFF800000> : vector<16xf32>
    %69 = vector.multi_reduction <maximumf>, %68, %cst_23 [1] : vector<16x16xf32> to vector<16xf32>
    %70 = vector.shape_cast %69 : vector<16xf32> to vector<16x1xf32>
    %71 = vector.broadcast %70 : vector<16x1xf32> to vector<16x16xf32>
    %72 = arith.subf %68, %71 : vector<16x16xf32>
    %73 = math.exp %72 : vector<16x16xf32>
    %cst_24 = arith.constant dense<0.000000e+00> : vector<16xf32>
    %74 = vector.multi_reduction <add>, %73, %cst_24 [1] : vector<16x16xf32> to vector<16xf32>
    %75 = vector.shape_cast %74 : vector<16xf32> to vector<16x1xf32>
    %76 = vector.broadcast %75 : vector<16x1xf32> to vector<16x16xf32>
    %77 = arith.divf %73, %76 : vector<16x16xf32>
    %cst_25 = arith.constant dense<0.000000e+00> : vector<16x8xf32>
    %78 = tpu.matmul %77, %67, %cst_25 {dimension_numbers = #tpu.dot_dimension_numbers<[1], [0], [0], [1], [0, 0, 1, 1], [], []>} : vector<16x16xf32>, vector<16x8xf32>, vector<16x8xf32> -> vector<16x8xf32>
    %c16 = arith.constant 16 : index
    %c0_26 = arith.constant 0 : index
    %79 = vector.load %arg3[%c16, %c0_26] : memref<32x32xf32, #tpu.memory_space<vmem>>, vector<8x32xf32>
    %cst_27 = arith.constant dense<0.000000e+00> : vector<16x32xf32>
    %80 = tpu.matmul %78, %79, %cst_27 {dimension_numbers = #tpu.dot_dimension_numbers<[1], [0], [0], [1], [0, 0, 1, 1], [], []>} : vector<16x8xf32>, vector<8x32xf32>, vector<16x32xf32> -> vector<16x32xf32>
    %81 = arith.addf %64, %80 : vector<16x32xf32>
    %82 = vector.extract_strided_slice %25 {offsets = [0, 24], sizes = [16, 8], strides = [1, 1]} : vector<16x32xf32> to vector<16x8xf32>
    %83 = vector.extract_strided_slice %28 {offsets = [0, 24], sizes = [16, 8], strides = [1, 1]} : vector<16x32xf32> to vector<16x8xf32>
    %84 = vector.extract_strided_slice %31 {offsets = [0, 24], sizes = [16, 8], strides = [1, 1]} : vector<16x32xf32> to vector<16x8xf32>
    %cst_28 = arith.constant dense<0.000000e+00> : vector<16x16xf32>
    %85 = tpu.matmul %82, %83, %cst_28 {dimension_numbers = #tpu.dot_dimension_numbers<[1], [1], [0], [0], [0, 0, 1, 0], [], []>} : vector<16x8xf32>, vector<16x8xf32>, vector<16x16xf32> -> vector<16x16xf32>
    %cst_29 = arith.constant dense<0xFF800000> : vector<16xf32>
    %86 = vector.multi_reduction <maximumf>, %85, %cst_29 [1] : vector<16x16xf32> to vector<16xf32>
    %87 = vector.shape_cast %86 : vector<16xf32> to vector<16x1xf32>
    %88 = vector.broadcast %87 : vector<16x1xf32> to vector<16x16xf32>
    %89 = arith.subf %85, %88 : vector<16x16xf32>
    %90 = math.exp %89 : vector<16x16xf32>
    %cst_30 = arith.constant dense<0.000000e+00> : vector<16xf32>
    %91 = vector.multi_reduction <add>, %90, %cst_30 [1] : vector<16x16xf32> to vector<16xf32>
    %92 = vector.shape_cast %91 : vector<16xf32> to vector<16x1xf32>
    %93 = vector.broadcast %92 : vector<16x1xf32> to vector<16x16xf32>
    %94 = arith.divf %90, %93 : vector<16x16xf32>
    %cst_31 = arith.constant dense<0.000000e+00> : vector<16x8xf32>
    %95 = tpu.matmul %94, %84, %cst_31 {dimension_numbers = #tpu.dot_dimension_numbers<[1], [0], [0], [1], [0, 0, 1, 1], [], []>} : vector<16x16xf32>, vector<16x8xf32>, vector<16x8xf32> -> vector<16x8xf32>
    %c24 = arith.constant 24 : index
    %c0_32 = arith.constant 0 : index
    %96 = vector.load %arg3[%c24, %c0_32] : memref<32x32xf32, #tpu.memory_space<vmem>>, vector<8x32xf32>
    %cst_33 = arith.constant dense<0.000000e+00> : vector<16x32xf32>
    %97 = tpu.matmul %95, %96, %cst_33 {dimension_numbers = #tpu.dot_dimension_numbers<[1], [0], [0], [1], [0, 0, 1, 1], [], []>} : vector<16x8xf32>, vector<8x32xf32>, vector<16x32xf32> -> vector<16x32xf32>
    %98 = arith.addf %81, %97 : vector<16x32xf32>
    %99 = vector.broadcast %6 : vector<1x32xf32> to vector<16x32xf32>
    %100 = arith.addf %98, %99 : vector<16x32xf32>
    %c0_34 = arith.constant 0 : index
    %c0_35 = arith.constant 0 : index
    %101 = vector.load %arg4[%c0_34, %c0_35] : memref<32x32xf32, #tpu.memory_space<vmem>>, vector<32x32xf32>
    %cst_36 = arith.constant dense<0.000000e+00> : vector<16x32xf32>
    %102 = tpu.matmul %100, %101, %cst_36 {dimension_numbers = #tpu.dot_dimension_numbers<[1], [0], [0], [1], [0, 0, 1, 1], [], []>} : vector<16x32xf32>, vector<32x32xf32>, vector<16x32xf32> -> vector<16x32xf32>
    %103 = vector.broadcast %13 : vector<1x32xf32> to vector<16x32xf32>
    %104 = arith.addf %102, %103 : vector<16x32xf32>
    %cst_37 = arith.constant dense<0.000000e+00> : vector<16xf32>
    %105 = vector.multi_reduction <add>, %104, %cst_37 [1] : vector<16x32xf32> to vector<16xf32>
    %106 = vector.shape_cast %105 : vector<16xf32> to vector<16x1xf32>
    %cst_38 = arith.constant 3.200000e+01 : f32
    %107 = vector.broadcast %cst_38 : f32 to vector<16x1xf32>
    %108 = arith.divf %106, %107 : vector<16x1xf32>
    %109 = vector.broadcast %108 : vector<16x1xf32> to vector<16x32xf32>
    %110 = arith.subf %104, %109 : vector<16x32xf32>
    %111 = arith.mulf %110, %110 : vector<16x32xf32>
    %cst_39 = arith.constant dense<0.000000e+00> : vector<16xf32>
    %112 = vector.multi_reduction <add>, %111, %cst_39 [1] : vector<16x32xf32> to vector<16xf32>
    %113 = vector.shape_cast %112 : vector<16xf32> to vector<16x1xf32>
    %cst_40 = arith.constant 3.200000e+01 : f32
    %114 = vector.broadcast %cst_40 : f32 to vector<16x1xf32>
    %115 = arith.divf %113, %114 : vector<16x1xf32>
    %cst_41 = arith.constant 9.99999974E-6 : f32
    %116 = vector.broadcast %cst_41 : f32 to vector<16x1xf32>
    %117 = arith.addf %115, %116 : vector<16x1xf32>
    %118 = math.rsqrt %117 : vector<16x1xf32>
    %119 = vector.broadcast %118 : vector<16x1xf32> to vector<16x32xf32>
    %120 = arith.mulf %110, %119 : vector<16x32xf32>
    %121 = vector.broadcast %14 : vector<1x32xf32> to vector<16x32xf32>
    %122 = arith.mulf %120, %121 : vector<16x32xf32>
    %123 = vector.broadcast %15 : vector<1x32xf32> to vector<16x32xf32>
    %124 = arith.addf %122, %123 : vector<16x32xf32>
    %cst_42 = arith.constant 0.000000e+00 : f32
    %125 = vector.broadcast %cst_42 : f32 to vector<16x32xf32>
    %126 = arith.maximumf %124, %125 : vector<16x32xf32>
    %c0_43 = arith.constant 0 : index
    %c0_44 = arith.constant 0 : index
    %127 = vector.load %arg5[%c0_43, %c0_44] : memref<32x32xf32, #tpu.memory_space<vmem>>, vector<32x32xf32>
    %cst_45 = arith.constant dense<0.000000e+00> : vector<16x32xf32>
    %128 = tpu.matmul %126, %127, %cst_45 {dimension_numbers = #tpu.dot_dimension_numbers<[1], [0], [0], [1], [0, 0, 1, 1], [], []>} : vector<16x32xf32>, vector<32x32xf32>, vector<16x32xf32> -> vector<16x32xf32>
    %129 = vector.broadcast %16 : vector<1x32xf32> to vector<16x32xf32>
    %130 = arith.addf %128, %129 : vector<16x32xf32>
    %cst_46 = arith.constant dense<0.000000e+00> : vector<16xf32>
    %131 = vector.multi_reduction <add>, %130, %cst_46 [1] : vector<16x32xf32> to vector<16xf32>
    %132 = vector.shape_cast %131 : vector<16xf32> to vector<16x1xf32>
    %cst_47 = arith.constant 3.200000e+01 : f32
    %133 = vector.broadcast %cst_47 : f32 to vector<16x1xf32>
    %134 = arith.divf %132, %133 : vector<16x1xf32>
    %135 = vector.broadcast %134 : vector<16x1xf32> to vector<16x32xf32>
    %136 = arith.subf %130, %135 : vector<16x32xf32>
    %137 = arith.mulf %136, %136 : vector<16x32xf32>
    %cst_48 = arith.constant dense<0.000000e+00> : vector<16xf32>
    %138 = vector.multi_reduction <add>, %137, %cst_48 [1] : vector<16x32xf32> to vector<16xf32>
    %139 = vector.shape_cast %138 : vector<16xf32> to vector<16x1xf32>
    %cst_49 = arith.constant 3.200000e+01 : f32
    %140 = vector.broadcast %cst_49 : f32 to vector<16x1xf32>
    %141 = arith.divf %139, %140 : vector<16x1xf32>
    %cst_50 = arith.constant 9.99999974E-6 : f32
    %142 = vector.broadcast %cst_50 : f32 to vector<16x1xf32>
    %143 = arith.addf %141, %142 : vector<16x1xf32>
    %144 = math.rsqrt %143 : vector<16x1xf32>
    %145 = vector.broadcast %144 : vector<16x1xf32> to vector<16x32xf32>
    %146 = arith.mulf %136, %145 : vector<16x32xf32>
    %147 = vector.broadcast %17 : vector<1x32xf32> to vector<16x32xf32>
    %148 = arith.mulf %146, %147 : vector<16x32xf32>
    %149 = vector.broadcast %18 : vector<1x32xf32> to vector<16x32xf32>
    %150 = arith.addf %148, %149 : vector<16x32xf32>
    %cst_51 = arith.constant 0.000000e+00 : f32
    %151 = vector.broadcast %cst_51 : f32 to vector<16x32xf32>
    %152 = arith.maximumf %150, %151 : vector<16x32xf32>
    %c0_52 = arith.constant 0 : index
    %c0_53 = arith.constant 0 : index
    %153 = vector.load %arg6[%c0_52, %c0_53] : memref<32x32xf32, #tpu.memory_space<vmem>>, vector<32x32xf32>
    %cst_54 = arith.constant dense<0.000000e+00> : vector<16x32xf32>
    %154 = tpu.matmul %152, %153, %cst_54 {dimension_numbers = #tpu.dot_dimension_numbers<[1], [0], [0], [1], [0, 0, 1, 1], [], []>} : vector<16x32xf32>, vector<32x32xf32>, vector<16x32xf32> -> vector<16x32xf32>
    %155 = vector.broadcast %7 : vector<1x32xf32> to vector<16x32xf32>
    %156 = arith.addf %154, %155 : vector<16x32xf32>
    %157 = arith.addf %156, %100 : vector<16x32xf32>
    %cst_55 = arith.constant dense<0.000000e+00> : vector<16xf32>
    %158 = vector.multi_reduction <add>, %157, %cst_55 [1] : vector<16x32xf32> to vector<16xf32>
    %159 = vector.shape_cast %158 : vector<16xf32> to vector<16x1xf32>
    %cst_56 = arith.constant 3.200000e+01 : f32
    %160 = vector.broadcast %cst_56 : f32 to vector<16x1xf32>
    %161 = arith.divf %159, %160 : vector<16x1xf32>
    %162 = vector.broadcast %161 : vector<16x1xf32> to vector<16x32xf32>
    %163 = arith.subf %157, %162 : vector<16x32xf32>
    %164 = arith.mulf %163, %163 : vector<16x32xf32>
    %cst_57 = arith.constant dense<0.000000e+00> : vector<16xf32>
    %165 = vector.multi_reduction <add>, %164, %cst_57 [1] : vector<16x32xf32> to vector<16xf32>
    %166 = vector.shape_cast %165 : vector<16xf32> to vector<16x1xf32>
    %cst_58 = arith.constant 3.200000e+01 : f32
    %167 = vector.broadcast %cst_58 : f32 to vector<16x1xf32>
    %168 = arith.divf %166, %167 : vector<16x1xf32>
    %cst_59 = arith.constant 9.99999974E-6 : f32
    %169 = vector.broadcast %cst_59 : f32 to vector<16x1xf32>
    %170 = arith.addf %168, %169 : vector<16x1xf32>
    %171 = math.rsqrt %170 : vector<16x1xf32>
    %172 = vector.broadcast %171 : vector<16x1xf32> to vector<16x32xf32>
    %173 = arith.mulf %163, %172 : vector<16x32xf32>
    %174 = vector.broadcast %8 : vector<1x32xf32> to vector<16x32xf32>
    %175 = arith.mulf %173, %174 : vector<16x32xf32>
    %176 = vector.broadcast %9 : vector<1x32xf32> to vector<16x32xf32>
    %177 = arith.addf %175, %176 : vector<16x32xf32>
    %cst_60 = arith.constant dense<0.000000e+00> : vector<16xf32>
    %178 = vector.multi_reduction <add>, %177, %cst_60 [1] : vector<16x32xf32> to vector<16xf32>
    %179 = vector.shape_cast %178 : vector<16xf32> to vector<16x1xf32>
    %cst_61 = arith.constant 3.200000e+01 : f32
    %180 = vector.broadcast %cst_61 : f32 to vector<16x1xf32>
    %181 = arith.divf %179, %180 : vector<16x1xf32>
    %182 = vector.broadcast %181 : vector<16x1xf32> to vector<16x32xf32>
    %183 = arith.subf %177, %182 : vector<16x32xf32>
    %184 = arith.mulf %183, %183 : vector<16x32xf32>
    %cst_62 = arith.constant dense<0.000000e+00> : vector<16xf32>
    %185 = vector.multi_reduction <add>, %184, %cst_62 [1] : vector<16x32xf32> to vector<16xf32>
    %186 = vector.shape_cast %185 : vector<16xf32> to vector<16x1xf32>
    %cst_63 = arith.constant 3.200000e+01 : f32
    %187 = vector.broadcast %cst_63 : f32 to vector<16x1xf32>
    %188 = arith.divf %186, %187 : vector<16x1xf32>
    %cst_64 = arith.constant 9.99999974E-6 : f32
    %189 = vector.broadcast %cst_64 : f32 to vector<16x1xf32>
    %190 = arith.addf %188, %189 : vector<16x1xf32>
    %191 = math.rsqrt %190 : vector<16x1xf32>
    %192 = vector.broadcast %191 : vector<16x1xf32> to vector<16x32xf32>
    %193 = arith.mulf %183, %192 : vector<16x32xf32>
    %194 = vector.broadcast %10 : vector<1x32xf32> to vector<16x32xf32>
    %195 = arith.mulf %193, %194 : vector<16x32xf32>
    %196 = vector.broadcast %11 : vector<1x32xf32> to vector<16x32xf32>
    %197 = arith.addf %195, %196 : vector<16x32xf32>
    %c0_65 = arith.constant 0 : index
    %c0_66 = arith.constant 0 : index
    %c0_67 = arith.constant 0 : index
    %198 = vector.load %arg9[%c0_65, %c0_66, %c0_67] : memref<1x16x32xf32, #tpu.memory_space<vmem>>, vector<1x16x32xf32>
    %199 = vector.shape_cast %198 : vector<1x16x32xf32> to vector<16x32xf32>
    %200 = vector.shape_cast %197 : vector<16x32xf32> to vector<1x16x32xf32>
    tpu.vector_store %arg9[%c0_65, %c0_66, %c0_67], %200 {strides = array<i32>} : memref<1x16x32xf32, #tpu.memory_space<vmem>>, vector<1x16x32xf32>,
    return
  }
  func.func @transform_0(%arg0: i32) -> (i32, i32, i32) {
    %c0_i32 = arith.constant 0 : i32
    %c0_i32_0 = arith.constant 0 : i32
    %c0_i32_1 = arith.constant 0 : i32
    return %arg0, %c0_i32, %c0_i32_0 : i32, i32, i32
  }
  func.func @transform_1(%arg0: i32) -> (i32, i32) {
    %c0_i32 = arith.constant 0 : i32
    %c0_i32_0 = arith.constant 0 : i32
    %c0_i32_1 = arith.constant 0 : i32
    return %c0_i32, %c0_i32_0 : i32, i32
  }
  func.func @transform_2(%arg0: i32) -> (i32, i32) {
    %c0_i32 = arith.constant 0 : i32
    %c0_i32_0 = arith.constant 0 : i32
    %c0_i32_1 = arith.constant 0 : i32
    return %c0_i32, %c0_i32_0 : i32, i32
  }
  func.func @transform_3(%arg0: i32) -> (i32, i32) {
    %c0_i32 = arith.constant 0 : i32
    %c0_i32_0 = arith.constant 0 : i32
    %c0_i32_1 = arith.constant 0 : i32
    return %c0_i32, %c0_i32_0 : i32, i32
  }
  func.func @transform_4(%arg0: i32) -> (i32, i32) {
    %c0_i32 = arith.constant 0 : i32
    %c0_i32_0 = arith.constant 0 : i32
    %c0_i32_1 = arith.constant 0 : i32
    return %c0_i32, %c0_i32_0 : i32, i32
  }
  func.func @transform_5(%arg0: i32) -> (i32, i32) {
    %c0_i32 = arith.constant 0 : i32
    %c0_i32_0 = arith.constant 0 : i32
    %c0_i32_1 = arith.constant 0 : i32
    return %c0_i32, %c0_i32_0 : i32, i32
  }
  func.func @transform_6(%arg0: i32) -> (i32, i32) {
    %c0_i32 = arith.constant 0 : i32
    %c0_i32_0 = arith.constant 0 : i32
    %c0_i32_1 = arith.constant 0 : i32
    return %c0_i32, %c0_i32_0 : i32, i32
  }
  func.func @transform_7(%arg0: i32) -> (i32, i32) {
    %c0_i32 = arith.constant 0 : i32
    %c0_i32_0 = arith.constant 0 : i32
    %c0_i32_1 = arith.constant 0 : i32
    return %c0_i32, %c0_i32_0 : i32, i32
  }
  func.func @transform_8(%arg0: i32) -> (i32, i32, i32) {
    %c0_i32 = arith.constant 0 : i32
    %c0_i32_0 = arith.constant 0 : i32
    %c0_i32_1 = arith.constant 0 : i32
    return %arg0, %c0_i32, %c0_i32_0 : i32, i32, i32
  }
}

</mosaic_0001>

<bundles_post_ra>
// kernel: encoder_forward.1
= control target key start
LH: loop header
LB: loop body
LE: loop exit
PB: predicated region body
PF: predicated region fallthrough
CT: control target
= control target key end

     0   :  { %s3583_s0 = inlined_call_operand.hbm [shape: f32[2,16,32], index: 0, kind: input, shape index: {}]   ;;  %s3584_s1 = inlined_call_operand.hbm [shape: f32[32,96], index: 1, kind: input, shape index: {}]   ;;  %s3585_s2 = inlined_call_operand.hbm [shape: f32[32,32], index: 2, kind: input, shape index: {}]   ;;  %s3586_s3 = inlined_call_operand.hbm [shape: f32[32,32], index: 3, kind: input, shape index: {}]   ;;  %s3587_s4 = inlined_call_operand.hbm [shape: f32[32,32], index: 4, kind: input, shape index: {}]   ;;  %s3588_s5 = inlined_call_operand.hbm [shape: f32[32,32], index: 5, kind: input, shape index: {}]   ;;  %s3589_s6 = inlined_call_operand.vmem [shape: f32[9,32], index: 6, kind: input, shape index: {}]   ;;  %s3590_s7 = inlined_call_operand.vmem [shape: f32[6,32], index: 7, kind: input, shape index: {}]   ;;  %s3591_s8 = inlined_call_operand.hbm [shape: f32[2,16,32], index: 8, kind: output, shape index: {}]  }
   0x1   :  { %3596 = sst [smem:[#allocation19_spill]] %s3584_s1 }
   0x2   :  { %13 = vsyncpa [#allocation3], 0 }
   0x3   :  { %15 = vsyncpa [#allocation3 + $0x1], 0 }
   0x4   :  { %16 = vsyncpa [#allocation6], 0 }
   0x5   :  { %17 = vsyncpa [#allocation9], 0 }
   0x6   :  { %18 = vsyncpa [#allocation12], 0 }
   0x7   :  { %19 = vsyncpa [#allocation4], 0 }
   0x8   :  { %21 = vsyncpa [#allocation4 + $0x1], 0  ;;  %s3073_s27 = smov 0   ;;  %s3075_s28 = smov 0  }
   0x9   :  { %s3077_s29 = smov 0   ;;  %s3079_s30 = smov 0  }
   0xa LB: > { %s3005_s9 = smov [#allocation5]   ;;  %s3094_s11 = sadd.s32 4294967295, %s3003_s30   ;;  %s3003_s30 = sphi %s3079_s30, %s3622_s30   ;;  %s2999_s29 = sphi %s3077_s29, %s3621_s29   ;;  %s2995_s28 = sphi %s3075_s28, %s3620_s28   ;;  %s2991_s27 = sphi %s3073_s27, %s3619_s27  }
   0xb   : > { %s243_s10 = sshll.u32 %s3005_s9, 4  ;;  %p2222_p0 = scmp.ge.s32.totalorder %s3003_s30, 1  ;;  %s3099_s10 = int_to_ptr.vmem [resolvable:$true] %s243_s10 }
   0xc   : > { %p3592_p1 = scmp.eq.s32.totalorder %s3094_s11, 0  ;;  %p231_p2 = scmp.lt.s32.totalorder %s3003_s30, 3 }
   0xd   : > { %s3006_s13 = smov [#allocation8]   ;;  %s3007_s16 = smov [#allocation7]  }
   0xe   : > { %p3101_p3 = pnand %p2222_p0, %p231_p2  ;;  %s269_s14 = sshll.u32 %s3006_s13, 4  ;;  %s3114_s14 = int_to_ptr.vmem [resolvable:$true] %s269_s14 }
   0xf   : > { %s256_s17 = sshll.u32 %s3007_s16, 4  ;;  %s3599_s1 = sld [smem:[#allocation19_spill]]  ;;  %s3116_s17 = int_to_ptr.vmem [resolvable:$true] %s256_s17 }
  0x10   : > { %s3597_s12 = scalar_select %p3101_p3, 1, 0 }
  0x11   : > { %p2578_p5 = pneg %p3101_p3 }
  0x13   : > { %p3110_p6 = pnand %p2578_p5, %p3592_p1 }
  0x15   : > { %s2755_s20 = scalar_lea.hbm %s3599_s1, 512  ;;  %p3126_p8 = pneg %p3110_p6 }
  0x16   : > { %p2756_p7 = scmp.ne.s32.totalorder %s3599_s1, %s2755_s20  ;;  %p2762_p11 = scmp.lt.u32.totalorder %s2755_s20, %s3599_s1 }
  0x18   : > { %p2758_p9 = pnand %p3126_p8, %p2756_p7 }
  0x1a   : > { %p2759_p10 = pneg %p2758_p9 }
  0x1c   : > { %p2764_p12 = pnand %p2762_p11, %p2759_p10 }
  0x1e   : > { %2767 = shalt.err (!%p2764_p12)
}
  0x1f   : > { %s2768_s26 = scalar_lea.vmem %s3099_s10, 512  ;;  %p2776_p5 = scmp.lt.s32.totalorder %s3099_s10, %s3099_s10 }
  0x20   : > { %p2769_p13 = scmp.ne.s32.totalorder %s3099_s10, %s2768_s26  ;;  %p2777_p4 = scmp.lt.s32.totalorder %s2768_s26, %s2768_s26 }
  0x22   : > { %p2771_p0 = pnand %p2769_p13, %p3126_p8  ;;  %p2778_p7 = por %p2777_p4, %p2776_p5 }
  0x24   : > { %p2772_p2 = pneg %p2771_p0 }
  0x26   : > { %p2779_p9 = pnand %p2778_p7, %p2772_p2 }
  0x28   : > { %2782 = shalt.err (!%p2779_p9)
}
  0x29   : > { %s3594_s9 = smov 128   ;;  %s3009_s13 = smov 8  }
  0x2a   : > { %2581 = dma.hbm_to_vmem [thread:$0]  (!%p3110_p6), %s3599_s1, 512, %s3099_s10, [#allocation6], %s3594_s9, %s3594_s9, %s3009_s13  }
  0x2b   : > { %s2783_s21 = scalar_lea.hbm %s3586_s3, 512 }
  0x2c   : > { %p2784_p4 = scmp.ne.s32.totalorder %s3586_s3, %s2783_s21  ;;  %p2790_p12 = scmp.lt.u32.totalorder %s2783_s21, %s3586_s3 }
  0x2e   : > { %p2786_p10 = pnand %p2784_p4, %p3126_p8 }
  0x30   : > { %p2787_p11 = pneg %p2786_p10 }
  0x32   : > { %p2792_p13 = pnand %p2790_p12, %p2787_p11 }
  0x34   : > { %2795 = shalt.err (!%p2792_p13)
}
  0x35   : > { %s2796_s10 = scalar_lea.vmem %s3114_s14, 512  ;;  %p2804_p7 = scmp.lt.s32.totalorder %s3114_s14, %s3114_s14 }
  0x36   : > { %p2797_p0 = scmp.ne.s32.totalorder %s3114_s14, %s2796_s10  ;;  %p2805_p9 = scmp.lt.s32.totalorder %s2796_s10, %s2796_s10 }
  0x38   : > { %p2799_p2 = pnand %p2797_p0, %p3126_p8  ;;  %p2806_p4 = por %p2805_p9, %p2804_p7 }
  0x3a   : > { %p2800_p5 = pneg %p2799_p2 }
  0x3c   : > { %p2807_p10 = pnand %p2806_p4, %p2800_p5 }
  0x3e   : > { %2810 = shalt.err (!%p2807_p10)
}
  0x3f   : > { %2587 = dma.hbm_to_vmem [thread:$0]  (!%p3110_p6), %s3586_s3, 512, %s3114_s14, [#allocation9], %s3594_s9, %s3594_s9, %s3009_s13  }
  0x40   : > { %s2811_s21 = scalar_lea.hbm %s3585_s2, 512 }
  0x41   : > { %p2812_p11 = scmp.ne.s32.totalorder %s3585_s2, %s2811_s21  ;;  %p2818_p0 = scmp.lt.u32.totalorder %s2811_s21, %s3585_s2 }
  0x43   : > { %p2814_p12 = pnand %p2812_p11, %p3126_p8 }
  0x45   : > { %p2815_p13 = pneg %p2814_p12 }
  0x47   : > { %p2820_p2 = pnand %p2818_p0, %p2815_p13 }
  0x49   : > { %2823 = shalt.err (!%p2820_p2)
}
  0x4a   : > { %s2824_s14 = scalar_lea.vmem %s3116_s17, 512  ;;  %p2832_p4 = scmp.lt.s32.totalorder %s3116_s17, %s3116_s17 }
  0x4b   : > { %p2825_p5 = scmp.ne.s32.totalorder %s3116_s17, %s2824_s14  ;;  %p2833_p10 = scmp.lt.s32.totalorder %s2824_s14, %s2824_s14 }
  0x4d   : > { %p2827_p7 = pnand %p2825_p5, %p3126_p8  ;;  %p2834_p11 = por %p2833_p10, %p2832_p4 }
  0x4f   : > { %p2828_p9 = pneg %p2827_p7 }
  0x51   : > { %p2835_p12 = pnand %p2834_p11, %p2828_p9 }
  0x53   : > { %2838 = shalt.err (!%p2835_p12)
}
  0x54   : > { %2584 = dma.hbm_to_vmem [thread:$0]  (!%p3110_p6), %s3585_s2, 512, %s3116_s17, [#allocation6], %s3594_s9, %s3594_s9, %s3009_s13  }
  0x55   : > { %s3010_s18 = smov [#allocation10]   ;;  %s3011_s20 = smov [#allocation11]  }
  0x56   : > { %s282_s19 = sshll.u32 %s3010_s18, 4  ;;  %s295_s21 = sshll.u32 %s3011_s20, 4  ;;  %s283_s19 = int_to_ptr.vmem [resolvable:$true] %s282_s19  ;;  %s296_s21 = int_to_ptr.vmem [resolvable:$true] %s295_s21 }
  0x57   : > { %s2839_s25 = scalar_lea.hbm %s3587_s4, 512 }
  0x58   : > { %p2840_p13 = scmp.ne.s32.totalorder %s3587_s4, %s2839_s25  ;;  %p2846_p5 = scmp.lt.u32.totalorder %s2839_s25, %s3587_s4 }
  0x5a   : > { %p2842_p0 = pnand %p2840_p13, %p3126_p8 }
  0x5c   : > { %p2843_p2 = pneg %p2842_p0 }
  0x5e   : > { %p2848_p7 = pnand %p2846_p5, %p2843_p2 }
  0x60   : > { %2851 = shalt.err (!%p2848_p7)
}
  0x61   : > { %s2852_s17 = scalar_lea.vmem %s283_s19, 512  ;;  %p2860_p11 = scmp.lt.s32.totalorder %s283_s19, %s283_s19 }
  0x62   : > { %p2853_p9 = scmp.ne.s32.totalorder %s283_s19, %s2852_s17  ;;  %p2861_p12 = scmp.lt.s32.totalorder %s2852_s17, %s2852_s17 }
  0x64   : > { %p2855_p4 = pnand %p2853_p9, %p3126_p8  ;;  %p2862_p1 = por %p2861_p12, %p2860_p11 }
  0x66   : > { %p2856_p10 = pneg %p2855_p4 }
  0x68   : > { %p2863_p3 = pnand %p2862_p1, %p2856_p10 }
  0x6a   : > { %2866 = shalt.err (!%p2863_p3)
}
  0x6b   : > { %2590 = dma.hbm_to_vmem [thread:$0]  (!%p3110_p6), %s3587_s4, 512, %s283_s19, [#allocation9], %s3594_s9, %s3594_s9, %s3009_s13  }
  0x6c   : > { %s2867_s22 = scalar_lea.hbm %s3588_s5, 512 }
  0x6d   : > { %p2868_p1 = scmp.ne.s32.totalorder %s3588_s5, %s2867_s22  ;;  %p2874_p0 = scmp.lt.u32.totalorder %s2867_s22, %s3588_s5 }
  0x6f   : > { %p2870_p3 = pnand %p2868_p1, %p3126_p8 }
  0x71   : > { %p2871_p13 = pneg %p2870_p3 }
  0x73   : > { %p2876_p2 = pnand %p2874_p0, %p2871_p13 }
  0x75   : > { %2879 = shalt.err (!%p2876_p2)
}
  0x76   : > { %s2880_s10 = scalar_lea.vmem %s296_s21, 512  ;;  %p2888_p4 = scmp.lt.s32.totalorder %s296_s21, %s296_s21 }
  0x77   : > { %p2881_p5 = scmp.ne.s32.totalorder %s296_s21, %s2880_s10  ;;  %p2889_p10 = scmp.lt.s32.totalorder %s2880_s10, %s2880_s10 }
  0x79   : > { %p2883_p7 = pnand %p2881_p5, %p3126_p8  ;;  %p2890_p11 = por %p2889_p10, %p2888_p4 }
  0x7b   : > { %p2884_p9 = pneg %p2883_p7 }
  0x7d   : > { %p2891_p12 = pnand %p2890_p11, %p2884_p9 }
  0x7f   : > { %2894 = shalt.err (!%p2891_p12)
}
  0x80   : > { %2593 = dma.hbm_to_vmem [thread:$0]  (!%p3110_p6), %s3588_s5, 512, %s296_s21, [#allocation12], %s3594_s9, %s3594_s9, %s3009_s13  }
  0x81   : > { %s2221_s15 = sadd.s32 4294967294, %s3003_s30   ;;  %s3246_s23 = sadd.s32 1, %s3003_s30  }
  0x82   : > { %s34_s1 = sadd.s32 1, %s2999_s29  ;;  %s31_s16 = ssub.s32 %s3003_s30, %s3246_s23 }
  0x83   : > { %p41_p8 = scmp.ne.s32.totalorder %s2999_s29, %s2995_s28  ;;  %p32_p1 = scmp.eq.s32.totalorder %s31_s16, 0 }
  0x84   : > { %p42_p3 = scmp.eq.s32.totalorder %s3003_s30, 0  ;;  %p47_p13 = scmp.ne.s32.totalorder %s2995_s28, %s2991_s27 }
  0x85   : > { %p218_p0 = scmp.eq.s32.totalorder %s3094_s11, 1  ;;  %p3601_p5 = scmp.eq.s32.totalorder %s3094_s11, 0 }
  0x86   : > { %s3258_s18 = scalar_select %p32_p1, %s2999_s29, %s34_s1  }
  0x87   : > { %p43_p2 = por %p42_p3, %p41_p8  ;;  %p3262_p7 = por %p3601_p5, %p47_p13 }
  0x88   : > { %p3266_p6 = por %p218_p0, %p41_p8  ;;  %p224_p9 = scmp.eq.s32.totalorder %s2221_s15, 1 }
  0x89   : > { %p2607_p4 = scmp.lt.s32.totalorder %s3003_s30, 2  ;;  %s315_s22 = sand.u32 1, %s2999_s29  }
  0x8a   : > { %s3603_s21 = scalar_select %p3266_p6, 1, 0 }
  0x8b   : > { %p3272_p10 = por %p224_p9, %p47_p13  ;;  %s2229_s25 = sshll.u32 %s315_s22, 4 }
  0x8c   : > { %s2286_s26 = sshll.u32 %s3003_s30, 8  ;;  %s319_s17 = scalar_lea.vmem [#allocation2], %s2229_s25 }
  0x8d   : > { %s3604_s24 = scalar_select %p3272_p10, 1, 0 }
  0x8e   : > { %s3280_s19 = scalar_lea.hbm %s3583_s0, %s2286_s26  ;;  %s326_s1 = sshll.u32 %s319_s17, 4  ;;  %s3286_s1 = int_to_ptr.vmem [resolvable:$true] %s326_s1 }
  0x8f   : > { %p3282_p11 = pnand %p2607_p4, %p43_p2  ;;  %s3288_s16 = scalar_lea.sflag [#allocation3], %s315_s22 }
  0x90   : > { %s2895_s9 = scalar_lea.hbm %s3280_s19, 256  ;;  %s2900_s14 = scalar_lea.hbm %s3583_s0, 512 }
  0x91   : > { %p2896_p12 = scmp.ne.s32.totalorder %s3280_s19, %s2895_s9  ;;  %p2897_p8 = pneg %p3282_p11 }
  0x92   : > { %p2901_p13 = scmp.lt.u32.totalorder %s3280_s19, %s3583_s0  ;;  %p2902_p0 = scmp.lt.u32.totalorder %s2900_s14, %s2895_s9 }
  0x93   : > { %p2898_p1 = pnand %p2897_p8, %p2896_p12  ;;  %p2904_p5 = scmp.lt.u32.totalorder %s2895_s9, %s3280_s19 }
  0x94   : > { %p2903_p2 = por %p2902_p0, %p2901_p13 }
  0x95   : > { %p2899_p3 = pneg %p2898_p1 }
  0x96   : > { %p2905_p9 = por %p2904_p5, %p2903_p2 }
  0x98   : > { %p2906_p4 = pnand %p2905_p9, %p2899_p3 }
  0x9a   : > { %2909 = shalt.err (!%p2906_p4)
}
  0x9b   : > { %s2910_s22 = scalar_lea.vmem %s3286_s1, 256  ;;  %s3012_s25 = smov [#allocation2]  }
  0x9c   : > { %p2911_p12 = scmp.ne.s32.totalorder %s3286_s1, %s2910_s22  ;;  %s2915_s26 = sshll.u32 %s3012_s25, 4  ;;  %s2916_s26 = int_to_ptr.vmem [resolvable:$false] %s2915_s26 }
  0x9d   : > { %s2917_s10 = scalar_lea.vmem %s2916_s26, 512  ;;  %p2918_p6 = scmp.lt.s32.totalorder %s3286_s1, %s2916_s26 }
  0x9e   : > { %p2913_p1 = pnand %p2911_p12, %p2897_p8  ;;  %p2919_p13 = scmp.lt.s32.totalorder %s2917_s10, %s2910_s22 }
  0xa0   : > { %p2914_p10 = pneg %p2913_p1  ;;  %p2920_p0 = por %p2919_p13, %p2918_p6 }
  0xa2   : > { %p2921_p2 = pnand %p2920_p0, %p2914_p10 }
  0xa4   : > { %2924 = shalt.err (!%p2921_p2)
}
  0xa5   : > { %s3606_s9 = smov 128   ;;  %p3607_p8 = scmp.ne.s32.totalorder %s3597_s12, 0 }
  0xa6   : > { %2597 = dma.hbm_to_vmem [thread:$0]  (!%p3282_p11), %s3280_s19, 256, %s3286_s1, %s3288_s16, %s3606_s9, %s3606_s9, %s3009_s13  }
  0xa7   : > { %338 = sbr.rel (%p3607_p8) target bundleno = 3925 (0xf55), region = 52  ;;  %s3322_s14 = sand.u32 (!%p3607_p8), 1, %s2995_s28  }
  0xa8   : > { %s2233_s17 = sshll.u32 (!%p3607_p8), %s3322_s14, 4  ;;  %s341_s22 = scalar_lea.sflag (!%p3607_p8), [#allocation3], %s3322_s14 }
  0xa9   : > { %s344_s15 = scalar_lea.vmem (!%p3607_p8), [#allocation2], %s2233_s17 }
  0xae   : > { %2970 = dma.done.wait (%p3262_p7), %s341_s22, 256  }
  0xaf   : > { %2972 = vsyncadd (%p3262_p7), %s341_s22, 4294967040  ;;  %p3608_p6 = scmp.eq.s32.totalorder %s3094_s11, 0 }
  0xb1   : > { %2974 = dma.done.wait (%p3608_p6), [#allocation6], 1024   ;;  %p3609_p10 = pmov %p3608_p6 }
  0xb2   : > { %p3610_p11 = pmov %p3608_p6 }
  0xb3   : > { %2976 = vsyncadd (%p3609_p10), [#allocation6], 4294966272 }
  0xb4   : > { %2978 = dma.done.wait (%p3610_p11), [#allocation9], 1024   ;;  %p3611_p3 = pmov %p3608_p6 }
  0xb6   : > { %2980 = vsyncadd (%p3611_p3), [#allocation9], 4294966272  ;;  %p3612_p5 = pmov %p3611_p3 }
  0xb7   : > { %p3613_p9 = pmov %p3611_p3 }
  0xb8   : > { %2982 = dma.done.wait (%p3612_p5), [#allocation12], 512  }
  0xb9   : > { %2984 = vsyncadd (%p3613_p9), [#allocation12], 4294966784  ;;  %v488_v0 = vlaneseq  ;;  %vm406_vm0 = vcmask 261120   ;;  %v402_v3 = vld [vmem:[#allocation5] sm:$0xff]  ;;  %v403_v4 = vld [vmem:[#allocation5 + $0x8] sm:$0xff]  ;;  %s3013_s20 = smov 32  }
  0xba   : > { %v404_v5 = vld [vmem:[#allocation5 + $0x10] sm:$0xff]  ;;  %v2476_v6 = vpack.c.bf16 %v403_v4, %v402_v3  ;;  %v405_v7 = vld [vmem:[#allocation5 + $0x18] sm:$0xff]  ;;  %v3351_v10 = vld [vmem:[%s3589_s6] sm:$0xff]  ;;  %vm522_vm1 = vcmask 64512   ;;  %s3014_s19 = smov 88   ;;  %s3015_s1 = smov 96  }
  0xbb   : > { %v3344_v1 = vshrl.u32 %v488_v0, 7  ;;  %v397_v8 = vld [vmem:[%s344_s15] sm:$0xff]  ;;  %v2480_v9 = vpack.c.bf16 %v405_v7, %v404_v5  ;;  %v398_v12 = vld [vmem:[%s344_s15 + $0x8] sm:$0xff]  ;;  %s3016_s16 = smov 120   ;;  %s3017_s25 = smov 112   ;;  %vm3386_vm2 = vmpackc.low %vm522_vm1, %vm522_vm1  ;;  %vm608_vm3 = vcmask 130048  }
  0xbc   : > { %2364 = vmatprep.mubr.msk.f32.mxu0 %vm406_vm0, %v397_v8  ;;  %2477 = vmatprep.subr.bf16.mxu0 %v2476_v6  ;;  %s3018_s26 = smov 80   ;;  %s3019_s10 = smov 64  }
  0xbd   : > { %v498_v2 = vsub.s32 1, %v3344_v1  ;;  %2479 = vmatpush3.bf16.msra.mxu0 %v2476_v6  ;;  %v490_v13 = vsub.s32 0, %v3344_v1  ;;  %v508_v49 = vsub.s32 2, %v3344_v1  ;;  %s3020_s9 = smov 72   ;;  %s3021_s22 = smov 104  }
  0xbe   : > { %2481 = vmatprep.subr.bf16.mxu0 %v2480_v9  ;;  %s3022_s15 = smov 56   ;;  %s3023_s12 = smov 48  }
  0xbf   : > { %v499_v11 = vrot.slane %v3351_v10, %v498_v2  ;;  %v491_v15 = vrot.slane %v3351_v10, %v490_v13  ;;  %v509_v51 = vrot.slane %v3351_v10, %v508_v49  ;;  %s3024_s13 = smov 40   ;;  %p3616_p4 = scmp.ne.s32.totalorder %s3603_s21, 0 }
  0xc1   : > { %501 = vrot.lane.b32.xlu0 %v499_v11, %s3013_s20  ;;  %2483 = vmatpush3.bf16.msra.mxu0 %v2480_v9 }
  0xc4   : > { %2365 = vmatmul.mubr.msk.f32.vlgmr.msra.gmra.mrb[0].mxu0 %vm406_vm0, %v398_v12 }
 0x133   : > { %v502_v14 = vpop.permute.xlu0 %501 }
 0x197   : > { %v3361_v16 = vpop.f32.mrb[0].mxu0 }
 0x198   : > { %v505_v17 = vadd.f32 %v3361_v16, %v502_v14  ;;  %v3364_v18 = vpop.f32.mrb[1].mxu0  ;;  %v493_v21 = vadd.f32 %v3361_v16, %v491_v15 }
 0x199   : > { %v492_v19 = vadd.f32 %v491_v15, %v3364_v18  ;;  %v504_v20 = vadd.f32 %v502_v14, %v3364_v18 }
 0x19a   : > { %v3377_v24 = vmul.f32 0.35355338, %v493_v21 }
 0x19b   : > { %v3369_v22 = vmul.f32 0.35355338, %v492_v19  ;;  %v3371_v23 = vpack.i.bf16 %v505_v17, %v504_v20 }
 0x19d   : > { %2673 = vrot.lane.b32.xlu1 %v3371_v23, %s3014_s19  ;;  %2668 = vrot.lane.b32.xlu0 %v3371_v23, %s3015_s1 }
 0x19e   : > { %2371 = vmatprep.mubr.msk.f32.mxu1 %vm522_vm1, %v3369_v22 }
 0x1a1   : > { %723 = vrot.lane.b32.xlu0 %v3377_v24, %s3016_s16  ;;  %721 = vrot.lane.b32.xlu1 %v3369_v22, %s3016_s16 }
 0x1a5   : > { %1084 = vrot.lane.b32.xlu0 %v3369_v22, %s3017_s25  ;;  %2678 = vrot.lane.b32.xlu1 %v3371_v23, %s3018_s26  ;;  %s396_s26 = scalar_lea.vmem [#allocation13], %s2233_s17  ;;  %s3025_s17 = smov [#allocation13]  }
 0x1a9   : > { %1086 = vrot.lane.b32.xlu1 %v3377_v24, %s3017_s25  ;;  %s2287_s25 = sshll.u32 %s3094_s11, 8  ;;  %s2087_s11 = scalar_lea.sflag [#allocation4], %s3322_s14 }
 0x20f   : > { %v2674_v25 = vpop.permute.xlu1 %2673  ;;  %v2669_v26 = vpop.permute.xlu0 %2668 }
 0x210   : > { %v2676_v27 = vunpack.i.h.bf16 %v2674_v25  ;;  %v2675_v28 = vunpack.i.l.bf16 %v2674_v25  ;;  %v2671_v29 = vunpack.i.h.bf16 %v2669_v26  ;;  %v2670_v30 = vunpack.i.l.bf16 %v2669_v26 }
 0x212   : > { %v2484_v32 = vpack.c.bf16 %v2671_v29, %v2670_v30  ;;  %v2494_v34 = vpack.c.bf16 %v2676_v27, %v2675_v28 }
 0x213   : > { %v722_v33 = vpop.permute.xlu1 %721  ;;  %v724_v39 = vpop.permute.xlu0 %723 }
 0x214   : > { %2486 = vmatprep.subr.msk.bf16.mxu1 %vm3386_vm2, %v2484_v32 }
 0x215   : > { %2489 = vmatpush3.bf16.xpose.msk.msra.mxu1 %vm3386_vm2, %v2484_v32 }
 0x216   : > { %2496 = vmatprep.subr.msk.bf16.mxu1 %vm3386_vm2, %v2494_v34 }
 0x217   : > { %v2679_v35 = vpop.permute.xlu1 %2678  ;;  %v1085_v40 = vpop.permute.xlu0 %1084 }
 0x218   : > { %v2681_v36 = vunpack.i.h.bf16 %v2679_v35  ;;  %v2680_v37 = vunpack.i.l.bf16 %v2679_v35 }
 0x21a   : > { %v2504_v38 = vpack.c.bf16 %v2681_v36, %v2680_v37 }
 0x21b   : > { %v1087_v41 = vpop.permute.xlu1 %1086 }
 0x21c   : > { %2372 = vmatmul.mubr.msk.f32.vlgmr.msra.gmra.mrb[0].mxu1 %vm522_vm1, %v3377_v24 }
 0x21d   : > { %2499 = vmatpush3.bf16.xpose.msk.msra.mxu1 %vm3386_vm2, %v2494_v34  ;;  %2385 = vmatprep.mubr.msk.f32.mxu1 %vm522_vm1, %v722_v33 }
 0x21e   : > { %2506 = vmatprep.subr.msk.bf16.mxu1 %vm3386_vm2, %v2504_v38 }
 0x224   : > { %2386 = vmatmul.mubr.msk.f32.vlgmr.msra.gmra.mrb[2].mxu1 %vm522_vm1, %v724_v39 }
 0x225   : > { %2509 = vmatpush3.bf16.xpose.msk.msra.mxu1 %vm3386_vm2, %v2504_v38  ;;  %2409 = vmatprep.mubr.msk.f32.mxu1 %vm522_vm1, %v1085_v40 }
 0x22c   : > { %2410 = vmatmul.mubr.msk.f32.vlgmr.msra.gmra.mrb[4].mxu1 %vm522_vm1, %v1087_v41 }
 0x2ef   : > { %v2373_v42 = vpop.f32.mrb[0].mxu1 }
 0x2f0   : > { %v599_v43 = vpop.f32.mrb[1].mxu1  ;;  %v612_v44 = vsel %vm608_vm3, %v2373_v42, -inf }
 0x2f1   : > { %613 = vmax.xlane.f32.xlu1 %v612_v44  ;;  %v609_v45 = vsel %vm608_vm3, %v599_v43, -inf }
 0x2f2   : > { %610 = vmax.xlane.f32.xlu0 %v609_v45 }
 0x2f7   : > { %v2387_v46 = vpop.f32.mrb[2].mxu1 }
 0x2f8   : > { %v803_v47 = vpop.f32.mrb[3].mxu1  ;;  %v815_v50 = vsel %vm608_vm3, %v2387_v46, -inf }
 0x2f9   : > { %v812_v48 = vsel %vm608_vm3, %v803_v47, -inf }
 0x2fa   : > { %813 = vmax.xlane.f32.xlu0 %v812_v48 }
 0x2fe   : > { %816 = vmax.xlane.f32.xlu0 %v815_v50 }
 0x2ff   : > { %v3416_v52 = vpop.f32.mrb[4].mxu1 }
 0x300   : > { %v3418_v53 = vpop.f32.mrb[5].mxu1  ;;  %v1178_v19 = vsel %vm608_vm3, %v3416_v52, -inf }
 0x302   : > { %511 = vrot.lane.b32.xlu1 %v509_v51, %s3019_s10 }
 0x37e   : > { %v614_v54 = vpop.xlane.xlu1 %613 }
 0x37f   : > { %v616_v55 = vsub.f32 %v2373_v42, %v614_v54  ;;  %v611_v56 = vpop.xlane.xlu0 %610 }
 0x380   : > { %v615_v57 = vsub.f32 %v599_v43, %v611_v56 }
 0x381   : > { %v619_v58 = vmul.f32 1.442695, %v616_v55 }
 0x382   : > { %v617_v59 = vmul.f32 1.442695, %v615_v57  ;;  %v512_v60 = vpop.permute.xlu1 %511 }
 0x383   : > { %2707 = vpow2.f32 %v619_v58  ;;  %v514_v61 = vadd.f32 %v512_v60, %v3364_v18  ;;  %v515_v62 = vadd.f32 %v3361_v16, %v512_v60  ;;  %v1175_v18 = vsel %vm608_vm3, %v3418_v53, -inf  ;;  %v921_v58 = vld [vmem:[#allocation7 + $0x8] sm:$0xff] }
 0x384   : > { %2709 = vpow2.f32 %v617_v59  ;;  %v720_v59 = vld [vmem:[#allocation7] sm:$0xff] }
 0x385   : > { %v3422_v63 = vpack.i.bf16 %v515_v62, %v514_v61 }
 0x387   : > { %2683 = vrot.lane.b32.xlu1 %v3422_v63, %s3019_s10  ;;  %v814_v0 = vpop.xlane.xlu0 %813  ;;  %s2100_s10 = sshll.u32 %s396_s26, 4  ;;  %s3538_s10 = int_to_ptr.vmem [resolvable:$true] %s2100_s10 }
 0x388   : > { %v818_v3 = vsub.f32 %v803_v47, %v814_v0 }
 0x38a   : > { %v820_v8 = vmul.f32 1.442695, %v818_v3 }
 0x38b   : > { %2693 = vrot.lane.b32.xlu1 %v3371_v23, %s3020_s9  ;;  %v817_v4 = vpop.xlane.xlu0 %816 }
 0x38c   : > { %v819_v5 = vsub.f32 %v2387_v46, %v817_v4 }
 0x38d   : > { %v2708_v6 = vpop.eup %2707 }
 0x38e   : > { %v2710_v7 = vpop.eup %2709  ;;  %v822_v9 = vmul.f32 1.442695, %v819_v5  ;;  %v624_v11 = vsel %vm608_vm3, %v2708_v6, 0.0 }
 0x38f   : > { %1368 = vrot.lane.b32.xlu1 %v3369_v22, %s3021_s22  ;;  %625 = vadd.xlane.f32.xlu0 %v624_v11  ;;  %v621_v12 = vsel %vm608_vm3, %v2710_v7, 0.0 }
 0x390   : > { %2711 = vpow2.f32 %v822_v9 }
 0x391   : > { %2713 = vpow2.f32 %v820_v8 }
 0x393   : > { %1370 = vrot.lane.b32.xlu1 %v3377_v24, %s3021_s22  ;;  %622 = vadd.xlane.f32.xlu0 %v621_v12 }
 0x39a   : > { %v2712_v14 = vpop.eup %2711 }
 0x39b   : > { %v827_v15 = vsel %vm608_vm3, %v2712_v14, 0.0  ;;  %v2714_v16 = vpop.eup %2713 }
 0x39c   : > { %828 = vadd.xlane.f32.xlu0 %v827_v15  ;;  %v824_v17 = vsel %vm608_vm3, %v2714_v16, 0.0 }
 0x3a0   : > { %825 = vadd.xlane.f32.xlu0 %v824_v17  ;;  %v1284_v17 = vld [vmem:[#allocation7 + $0x10] sm:$0xff] }
 0x3b6   : > { %2688 = vrot.lane.b32.xlu0 %v3422_v63, %s3022_s15  ;;  %s3536_s15 = scalar_lea.hbm %s3591_s8, %s2287_s25 }
 0x3b7   : > { %1176 = vmax.xlane.f32.xlu1 %v1175_v18 }
 0x3d5   : > { %1179 = vmax.xlane.f32.xlu0 %v1178_v19 }
 0x3f9   : > { %v2684_v20 = vpop.permute.xlu1 %2683 }
 0x3fa   : > { %v2686_v21 = vunpack.i.h.bf16 %v2684_v20  ;;  %v2685_v22 = vunpack.i.l.bf16 %v2684_v20 }
 0x3fc   : > { %v2490_v23 = vpack.c.bf16 %v2686_v21, %v2685_v22 }
 0x3fd   : > { %v2694_v24 = vpop.permute.xlu1 %2693 }
 0x3fe   : > { %v2696_v25 = vunpack.i.h.bf16 %v2694_v24  ;;  %v2695_v26 = vunpack.i.l.bf16 %v2694_v24  ;;  %2491 = vmatprep.subr.bf16.mxu0 %v2490_v23 }
 0x3ff   : > { %2493 = vmatpush3.bf16.msra.mxu0 %v2490_v23 }
 0x400   : > { %v2514_v27 = vpack.c.bf16 %v2696_v25, %v2695_v26 }
 0x401   : > { %v1369_v28 = vpop.permute.xlu1 %1368 }
 0x402   : > { %2516 = vmatprep.subr.msk.bf16.mxu1 %vm3386_vm2, %v2514_v27  ;;  %2428 = vmatprep.mubr.msk.f32.mxu1 %vm522_vm1, %v1369_v28 }
 0x403   : > { %2519 = vmatpush3.bf16.xpose.msk.msra.mxu1 %vm3386_vm2, %v2514_v27 }
 0x405   : > { %v1371_v29 = vpop.permute.xlu1 %1370 }
 0x40a   : > { %2429 = vmatmul.mubr.msk.f32.vlgmr.msra.gmra.mrb[6].mxu1 %vm522_vm1, %v1371_v29 }
 0x41c   : > { %v626_v30 = vpop.xlane.xlu0 %625 }
 0x41d   : > { %2715 = vrcp.f32 %v626_v30 }
 0x420   : > { %v623_v32 = vpop.xlane.xlu0 %622 }
 0x421   : > { %2717 = vrcp.f32 %v623_v32 }
 0x427   : > { %v2716_v34 = vpop.eup %2715 }
 0x428   : > { %v630_v37 = vmul.f32 %v2716_v34, %v2708_v6 }
 0x429   : > { %v829_v33 = vpop.xlane.xlu0 %828 }
 0x42a   : > { %2719 = vrcp.f32 %v829_v33 }
 0x42b   : > { %v2718_v35 = vpop.eup %2717 }
 0x42c   : > { %v628_v36 = vmul.f32 %v2718_v35, %v2710_v7  ;;  %v1568_v35 = vld [vmem:[#allocation7 + $0x18] sm:$0xff] }
 0x42d   : > { %v826_v38 = vpop.xlane.xlu0 %825 }
 0x42e   : > { %2721 = vrcp.f32 %v826_v38  ;;  %2378 = vmatprep.mubr.msk.f32.mxu0 %vm608_vm3, %v628_v36 }
 0x42f   : > { %2379 = vmatmul.mubr.msk.f32.vlgmr.msra.gmra.mrb[2].mxu0 %vm608_vm3, %v630_v37 }
 0x431   : > { %v2689_v31 = vpop.permute.xlu0 %2688 }
 0x432   : > { %v2691_v39 = vunpack.i.h.bf16 %v2689_v31  ;;  %v2690_v40 = vunpack.i.l.bf16 %v2689_v31 }
 0x434   : > { %v2500_v41 = vpack.c.bf16 %v2691_v39, %v2690_v40  ;;  %v2720_v42 = vpop.eup %2719 }
 0x435   : > { %v833_v45 = vmul.f32 %v2720_v42, %v2712_v14  ;;  %v1659_v42 = vld [vmem:[#allocation8 + $0x8] sm:$0xff] }
 0x436   : > { %2501 = vmatprep.subr.bf16.mxu0 %v2500_v41 }
 0x437   : > { %2503 = vmatpush3.bf16.msra.mxu0 %v2500_v41  ;;  %v1658_v41 = vld [vmem:[#allocation8] sm:$0xff] }
 0x438   : > { %v2722_v43 = vpop.eup %2721  ;;  %2395 = vmatprep.subr.mxu0 %v921_v58 }
 0x439   : > { %v831_v44 = vmul.f32 %v2722_v43, %v2714_v16  ;;  %v2524_v43 = vpack.c.bf16 %v1659_v42, %v1658_v41 }
 0x43b   : > { %2392 = vmatprep.mubr.msk.f32.mxu0 %vm608_vm3, %v831_v44  ;;  %2525 = vmatprep.subr.bf16.mxu1 %v2524_v43 }
 0x43c   : > { %2393 = vmatmul.mubr.msk.f32.vlgmr.msra.gmra.mrb[4].mxu0 %vm608_vm3, %v833_v45  ;;  %2527 = vmatpush3.bf16.msra.mxu1 %v2524_v43 }
 0x43d   : > { %2396 = vmatpush3.msra.mxu0 %v921_v58 }
 0x43e   : > { %2400 = vmatprep.subr.mxu0 %v720_v59 }
 0x444   : > { %v1177_v46 = vpop.xlane.xlu1 %1176 }
 0x445   : > { %v1181_v47 = vsub.f32 %v3418_v53, %v1177_v46  ;;  %v1660_v46 = vld [vmem:[#allocation8 + $0x10] sm:$0xff] }
 0x447   : > { %v1183_v48 = vmul.f32 1.442695, %v1181_v47  ;;  %v1661_v47 = vld [vmem:[#allocation8 + $0x18] sm:$0xff] }
 0x449   : > { %2723 = vpow2.f32 %v1183_v48  ;;  %v2528_v48 = vpack.c.bf16 %v1661_v47, %v1660_v46 }
 0x44b   : > { %2529 = vmatprep.subr.bf16.mxu1 %v2528_v48 }
 0x44c   : > { %2531 = vmatpush3.bf16.msra.mxu1 %v2528_v48 }
 0x453   : > { %v2724_v50 = vpop.eup %2723 }
 0x454   : > { %v1187_v51 = vsel %vm608_vm3, %v2724_v50, 0.0 }
 0x455   : > { %1188 = vadd.xlane.f32.xlu1 %v1187_v51 }
 0x462   : > { %v1180_v54 = vpop.xlane.xlu0 %1179 }
 0x463   : > { %v1182_v55 = vsub.f32 %v3416_v52, %v1180_v54 }
 0x465   : > { %v1185_v56 = vmul.f32 1.442695, %v1182_v55 }
 0x466   : > { %2698 = vrot.lane.b32.xlu1 %v3422_v63, %s3023_s12  ;;  %s2925_s12 = scalar_lea.vmem %s3538_s10, 256 }
 0x467   : > { %2725 = vpow2.f32 %v1185_v56  ;;  %p2926_p7 = scmp.ne.s32.totalorder %s3538_s10, %s2925_s12 }
 0x469   : > { %p2927_p12 = pnand %p2926_p7, %p3616_p4 }
 0x46a   : > { %2703 = vrot.lane.b32.xlu1 %v3422_v63, %s3024_s13  ;;  %s2929_s13 = sshll.u32 %s3025_s17, 4  ;;  %s2930_s13 = int_to_ptr.vmem [resolvable:$false] %s2929_s13 }
 0x46b   : > { %p2928_p1 = pneg %p2927_p12  ;;  %s2931_s20 = scalar_lea.vmem %s2930_s13, 512 }
 0x46c   : > { %p2932_p13 = scmp.lt.s32.totalorder %s3538_s10, %s2930_s13  ;;  %p2933_p0 = scmp.lt.s32.totalorder %s2931_s20, %s2925_s12 }
 0x46e   : > { %p2934_p2 = por %p2933_p0, %p2932_p13 }
 0x470   : > { %p2935_p8 = pnand %p2934_p2, %p2928_p1 }
 0x471   : > { %v2726_v57 = vpop.eup %2725 }
 0x472   : > { %v1190_v53 = vsel %vm608_vm3, %v2726_v57, 0.0 }
 0x473   : > { %1191 = vadd.xlane.f32.xlu0 %v1190_v53  ;;  %v3482_v53 = vld [vmem:[%s3590_s7] sm:$0x3f] }
 0x474   : > { %v1665_v58 = vrot.slane %v3482_v53, %v490_v13 }
 0x4dd   : > { %v2430_v60 = vpop.f32.mrb[6].mxu1 }
 0x4de   : > { %v1450_v61 = vpop.f32.mrb[7].mxu1  ;;  %v1462_v62 = vsel %vm608_vm3, %v2430_v60, -inf }
 0x4df   : > { %v1459_v52 = vsel %vm608_vm3, %v1450_v61, -inf }
 0x4e0   : > { %1460 = vmax.xlane.f32.xlu0 %v1459_v52 }
 0x4e2   : > { %v1189_v63 = vpop.xlane.xlu1 %1188 }
 0x4e3   : > { %2727 = vrcp.f32 %v1189_v63 }
 0x4e4   : > { %1463 = vmax.xlane.f32.xlu0 %v1462_v62 }
 0x4e6   : > { %v2699_v4 = vpop.permute.xlu1 %2698 }
 0x4e7   : > { %v2701_v6 = vunpack.i.h.bf16 %v2699_v4  ;;  %v2700_v7 = vunpack.i.l.bf16 %v2699_v4 }
 0x4e9   : > { %v2510_v11 = vpack.c.bf16 %v2701_v6, %v2700_v7 }
 0x4ea   : > { %v2704_v14 = vpop.permute.xlu1 %2703 }
 0x4eb   : > { %v2706_v18 = vunpack.i.h.bf16 %v2704_v14  ;;  %v2705_v19 = vunpack.i.l.bf16 %v2704_v14  ;;  %v1789_v14 = vld [vmem:[#allocation10 + $0x8] sm:$0xff] }
 0x4ed   : > { %v2728_v12 = vpop.eup %2727  ;;  %v2520_v21 = vpack.c.bf16 %v2706_v18, %v2705_v19 }
 0x4ee   : > { %v1194_v16 = vmul.f32 %v2728_v12, %v2724_v50  ;;  %v1654_v50 = vsub.s32 3, %v3344_v1  ;;  %v1788_v12 = vld [vmem:[#allocation10] sm:$0xff] }
 0x4f0   : > { %v1655_v51 = vrot.slane %v3351_v10, %v1654_v50 }
 0x500   : > { %v1192_v5 = vpop.xlane.xlu0 %1191 }
 0x501   : > { %2729 = vrcp.f32 %v1192_v5 }
 0x502   : > { %v2380_v0 = vpop.f32.mrb[2].mxu0 }
 0x503   : > { %v711_v3 = vpop.f32.mrb[3].mxu0 }
 0x50b   : > { %v2730_v15 = vpop.eup %2729 }
 0x50c   : > { %v1196_v20 = vmul.f32 %v2730_v15, %v2726_v57  ;;  %v2532_v15 = vpack.c.bf16 %v1789_v14, %v1788_v12 }
 0x50f   : > { %v2394_v8 = vpop.f32.mrb[4].mxu0 }
 0x510   : > { %v912_v9 = vpop.f32.mrb[5].mxu0 }
 0x511   : > { %2397 = vmatprep.mubr.msk.f32.mxu0 %vm522_vm1, %v912_v9 }
 0x512   : > { %2398 = vmatmul.mubr.msk.f32.vlgmr.msra.gmra.mrb[6].mxu0 %vm522_vm1, %v2394_v8 }
 0x513   : > { %2401 = vmatpush3.msra.mxu0 %v720_v59  ;;  %2402 = vmatprep.mubr.msk.f32.mxu0 %vm522_vm1, %v711_v3 }
 0x514   : > { %2511 = vmatprep.subr.bf16.mxu0 %v2510_v11 }
 0x51a   : > { %2403 = vmatmul.mubr.msk.f32.vlgmr.msra.gmra.mrb[6].mxu0 %vm522_vm1, %v2380_v0 }
 0x51b   : > { %2513 = vmatpush3.bf16.msra.mxu0 %v2510_v11  ;;  %2416 = vmatprep.mubr.msk.f32.mxu0 %vm608_vm3, %v1194_v16  ;;  %v1790_v16 = vld [vmem:[#allocation10 + $0x10] sm:$0xff] }
 0x51c   : > { %2419 = vmatprep.subr.mxu0 %v1284_v17 }
 0x51e   : > { %2417 = vmatmul.mubr.msk.f32.vlgmr.msra.gmra.mrb[8].mxu0 %vm608_vm3, %v1196_v20 }
 0x51f   : > { %2420 = vmatpush3.msra.mxu0 %v1284_v17  ;;  %v1791_v17 = vld [vmem:[#allocation10 + $0x18] sm:$0xff] }
 0x520   : > { %2521 = vmatprep.subr.bf16.mxu0 %v2520_v21  ;;  %v2536_v18 = vpack.c.bf16 %v1791_v17, %v1790_v16 }
 0x56d   : > { %v1461_v22 = vpop.xlane.xlu0 %1460 }
 0x56e   : > { %v1465_v23 = vsub.f32 %v1450_v61, %v1461_v22 }
 0x570   : > { %v1467_v24 = vmul.f32 1.442695, %v1465_v23 }
 0x571   : > { %v1464_v25 = vpop.xlane.xlu0 %1463 }
 0x572   : > { %2731 = vpow2.f32 %v1467_v24  ;;  %v1466_v26 = vsub.f32 %v2430_v60, %v1464_v25  ;;  %v1777_v25 = vrot.slane %v3482_v53, %v498_v2  ;;  %v1795_v2 = vrot.slane %v3482_v53, %v1654_v50 }
 0x574   : > { %v1469_v27 = vmul.f32 1.442695, %v1466_v26 }
 0x576   : > { %2733 = vpow2.f32 %v1469_v27  ;;  %v1783_v27 = vrot.slane %v3482_v53, %v508_v49 }
 0x57c   : > { %v2732_v28 = vpop.eup %2731 }
 0x57d   : > { %v1471_v29 = vsel %vm608_vm3, %v2732_v28, 0.0 }
 0x57e   : > { %1472 = vadd.xlane.f32.xlu0 %v1471_v29 }
 0x580   : > { %v2734_v30 = vpop.eup %2733 }
 0x581   : > { %v1474_v32 = vsel %vm608_vm3, %v2734_v30, 0.0 }
 0x582   : > { %1475 = vadd.xlane.f32.xlu0 %v1474_v32 }
 0x5f1   : > { %v2418_v33 = vpop.f32.mrb[8].mxu0 }
 0x5f2   : > { %v1275_v34 = vpop.f32.mrb[9].mxu0 }
 0x5f3   : > { %2421 = vmatprep.mubr.msk.f32.mxu0 %vm522_vm1, %v1275_v34 }
 0x5f4   : > { %2422 = vmatmul.mubr.msk.f32.vlgmr.msra.gmra.mrb[6].mxu0 %vm522_vm1, %v2418_v33 }
 0x5f5   : > { %2523 = vmatpush3.bf16.msra.mxu0 %v2520_v21 }
 0x5f6   : > { %2438 = vmatprep.subr.mxu0 %v1568_v35 }
 0x60b   : > { %v1473_v36 = vpop.xlane.xlu0 %1472 }
 0x60c   : > { %2735 = vrcp.f32 %v1473_v36 }
 0x60f   : > { %v1476_v37 = vpop.xlane.xlu0 %1475 }
 0x610   : > { %2737 = vrcp.f32 %v1476_v37 }
 0x616   : > { %v2736_v38 = vpop.eup %2735 }
 0x617   : > { %v1478_v31 = vmul.f32 %v2736_v38, %v2732_v28 }
 0x619   : > { %2435 = vmatprep.mubr.msk.f32.mxu0 %vm608_vm3, %v1478_v31 }
 0x61a   : > { %v2738_v39 = vpop.eup %2737 }
 0x61b   : > { %v1480_v40 = vmul.f32 %v2738_v39, %v2734_v30 }
 0x61d   : > { %2436 = vmatmul.mubr.msk.f32.vlgmr.msra.gmra.mrb[10].mxu0 %vm608_vm3, %v1480_v40 }
 0x61e   : > { %2439 = vmatpush3.msra.mxu0 %v1568_v35 }
 0x61f   : > { %2533 = vmatprep.subr.bf16.mxu0 %v2532_v15 }
 0x6f0   : > { %v2437_v44 = vpop.f32.mrb[10].mxu0 }
 0x6f1   : > { %v1559_v45 = vpop.f32.mrb[11].mxu0 }
 0x6f2   : > { %2440 = vmatprep.mubr.msk.f32.mxu0 %vm522_vm1, %v1559_v45 }
 0x6f3   : > { %2441 = vmatmul.mubr.msk.f32.vlgmr.msra.gmra.mrb[6].mxu0 %vm522_vm1, %v2437_v44 }
 0x6f4   : > { %2535 = vmatpush3.bf16.msra.mxu0 %v2532_v15 }
 0x6f5   : > { %2537 = vmatprep.subr.bf16.mxu0 %v2536_v18 }
 0x6f8   : > { %2539 = vmatpush3.bf16.msra.mxu0 %v2536_v18 }
 0x7c6   : > { %v2442_v54 = vpop.f32.mrb[6].mxu0 }
 0x7c7   : > { %v1641_v55 = vpop.f32.mrb[7].mxu0  ;;  %v3473_v57 = vadd.f32 %v2442_v54, %v1655_v51 }
 0x7c8   : > { %v3471_v56 = vadd.f32 %v1655_v51, %v1641_v55  ;;  %v1917_v55 = vld [vmem:[#allocation11] sm:$0xff] }
 0x7ca   : > { %2451 = vmatprep.mubr.msk.f32.mxu1 %vm406_vm0, %v3471_v56 }
 0x7cb   : > { %2452 = vmatmul.mubr.msk.f32.vlgmr.msra.gmra.mrb[8].mxu1 %vm406_vm0, %v3473_v57 }
 0x89e   : > { %v2453_v59 = vpop.f32.mrb[8].mxu1 }
 0x89f   : > { %v1744_v60 = vadd.f32 %v2453_v59, %v1665_v58  ;;  %v1738_v61 = vpop.f32.mrb[9].mxu1 }
 0x8a0   : > { %v1739_v52 = vadd.f32 %v1738_v61, %v1665_v58  ;;  %v1918_v58 = vld [vmem:[#allocation11 + $0x8] sm:$0xff]  ;;  %v1920_v61 = vld [vmem:[#allocation11 + $0x18] sm:$0xff] }
 0x8a1   : > { %v1750_v62 = vsel %vm406_vm0, %v1744_v60, 0.0  ;;  %v2540_v59 = vpack.c.bf16 %v1918_v58, %v1917_v55 }
 0x8a2   : > { %1751 = vadd.xlane.f32.xlu1 %v1750_v62  ;;  %v1747_v0 = vsel %vm406_vm0, %v1739_v52, 0.0 }
 0x8a3   : > { %1748 = vadd.xlane.f32.xlu0 %v1747_v0  ;;  %2541 = vmatprep.subr.bf16.mxu1 %v2540_v59 }
 0x8a4   : > { %2543 = vmatpush3.bf16.msra.mxu1 %v2540_v59 }
 0x92f   : > { %v1752_v3 = vpop.xlane.xlu1 %1751 }
 0x930   : > { %v1755_v63 = vmul.f32 0.03125, %v1752_v3  ;;  %v1749_v4 = vpop.xlane.xlu0 %1748 }
 0x931   : > { %v1754_v5 = vmul.f32 0.03125, %v1749_v4 }
 0x932   : > { %v1757_v6 = vsub.f32 %v1744_v60, %v1755_v63  ;;  %v1919_v60 = vld [vmem:[#allocation11 + $0x10] sm:$0xff] }
 0x933   : > { %v1756_v7 = vsub.f32 %v1739_v52, %v1754_v5  ;;  %v2544_v52 = vpack.c.bf16 %v1920_v61, %v1919_v60 }
 0x934   : > { %v1759_v13 = vmul.f32 %v1757_v6, %v1757_v6 }
 0x935   : > { %v1758_v8 = vmul.f32 %v1756_v7, %v1756_v7  ;;  %2545 = vmatprep.subr.bf16.mxu1 %v2544_v52 }
 0x936   : > { %v1763_v11 = vsel %vm406_vm0, %v1759_v13, 0.0  ;;  %2547 = vmatpush3.bf16.msra.mxu1 %v2544_v52 }
 0x937   : > { %v1760_v9 = vsel %vm406_vm0, %v1758_v8, 0.0 }
 0x938   : > { %1761 = vadd.xlane.f32.xlu0 %v1760_v9 }
 0x93c   : > { %1764 = vadd.xlane.f32.xlu0 %v1763_v11 }
 0x9c5   : > { %v1762_v19 = vpop.xlane.xlu0 %1761 }
 0x9c6   : > { %v1766_v20 = vmul.f32 0.03125, %v1762_v19 }
 0x9c8   : > { %v1768_v21 = vadd.f32 1e-05, %v1766_v20 }
 0x9c9   : > { %v1765_v22 = vpop.xlane.xlu0 %1764 }
 0x9ca   : > { %2739 = vrsqrt.f32 %v1768_v21  ;;  %v1767_v23 = vmul.f32 0.03125, %v1765_v22 }
 0x9cc   : > { %v1769_v24 = vadd.f32 1e-05, %v1767_v23 }
 0x9ce   : > { %2741 = vrsqrt.f32 %v1769_v24 }
 0x9d4   : > { %v2740_v26 = vpop.eup %2739 }
 0x9d5   : > { %v1772_v28 = vmul.f32 %v2740_v26, %v1756_v7  ;;  %v1911_v7 = vsub.s32 5, %v3344_v1 }
 0x9d7   : > { %v1778_v29 = vmul.f32 %v1777_v25, %v1772_v28  ;;  %v1912_v11 = vrot.slane %v3482_v53, %v1911_v7 }
 0x9d8   : > { %v2742_v30 = vpop.eup %2741 }
 0x9d9   : > { %v1773_v32 = vmul.f32 %v2742_v30, %v1757_v6  ;;  %v1784_v33 = vadd.f32 %v1783_v27, %v1778_v29  ;;  %v1905_v6 = vsub.s32 4, %v3344_v1 }
 0x9db   : > { %v1786_v34 = vmax.f32 %v1784_v33, 0.0  ;;  %v1779_v35 = vmul.f32 %v1777_v25, %v1773_v32  ;;  %v1906_v8 = vrot.slane %v3482_v53, %v1905_v6  ;;  %v1924_v21 = vrot.slane %v3351_v10, %v1905_v6 }
 0x9dd   : > { %2462 = vmatprep.mubr.msk.f32.mxu0 %vm406_vm0, %v1786_v34  ;;  %v1785_v36 = vadd.f32 %v1783_v27, %v1779_v35 }
 0x9df   : > { %v1787_v37 = vmax.f32 %v1785_v36, 0.0 }
 0x9e1   : > { %2463 = vmatmul.mubr.msk.f32.vlgmr.msra.gmra.mrb[12].mxu0 %vm406_vm0, %v1787_v37 }
 0xab4   : > { %v2464_v38 = vpop.f32.mrb[12].mxu0 }
 0xab5   : > { %v1868_v31 = vpop.f32.mrb[13].mxu0  ;;  %v1874_v40 = vadd.f32 %v2464_v38, %v1795_v2 }
 0xab6   : > { %v1869_v39 = vadd.f32 %v1868_v31, %v1795_v2 }
 0xab7   : > { %v1880_v41 = vsel %vm406_vm0, %v1874_v40, 0.0 }
 0xab8   : > { %v1877_v49 = vsel %vm406_vm0, %v1869_v39, 0.0 }
 0xab9   : > { %1878 = vadd.xlane.f32.xlu0 %v1877_v49 }
 0xabd   : > { %1881 = vadd.xlane.f32.xlu0 %v1880_v41  ;;  %v2042_v41 = vsub.s32 6, %v3344_v1 }
 0xb46   : > { %v1879_v42 = vpop.xlane.xlu0 %1878 }
 0xb47   : > { %v1883_v43 = vmul.f32 0.03125, %v1879_v42  ;;  %v2037_v42 = vrot.slane %v3351_v10, %v1911_v7 }
 0xb49   : > { %v1885_v44 = vsub.f32 %v1869_v39, %v1883_v43 }
 0xb4a   : > { %v1882_v45 = vpop.xlane.xlu0 %1881 }
 0xb4b   : > { %v1884_v46 = vmul.f32 0.03125, %v1882_v45  ;;  %v1887_v47 = vmul.f32 %v1885_v44, %v1885_v44  ;;  %v2043_v45 = vrot.slane %v3351_v10, %v2042_v41 }
 0xb4d   : > { %v1886_v48 = vsub.f32 %v1874_v40, %v1884_v46  ;;  %v1889_v51 = vsel %vm406_vm0, %v1887_v47, 0.0 }
 0xb4e   : > { %1890 = vadd.xlane.f32.xlu0 %v1889_v51 }
 0xb4f   : > { %v1888_v50 = vmul.f32 %v1886_v48, %v1886_v48 }
 0xb51   : > { %v1892_v54 = vsel %vm406_vm0, %v1888_v50, 0.0 }
 0xb52   : > { %1893 = vadd.xlane.f32.xlu0 %v1892_v54 }
 0xbdb   : > { %v1891_v62 = vpop.xlane.xlu0 %1890 }
 0xbdc   : > { %v1895_v0 = vmul.f32 0.03125, %v1891_v62 }
 0xbde   : > { %v1897_v3 = vadd.f32 1e-05, %v1895_v0 }
 0xbdf   : > { %v1894_v63 = vpop.xlane.xlu0 %1893 }
 0xbe0   : > { %2743 = vrsqrt.f32 %v1897_v3  ;;  %v1896_v4 = vmul.f32 0.03125, %v1894_v63 }
 0xbe2   : > { %v1898_v5 = vadd.f32 1e-05, %v1896_v4 }
 0xbe4   : > { %2745 = vrsqrt.f32 %v1898_v5 }
 0xbea   : > { %v2744_v9 = vpop.eup %2743 }
 0xbeb   : > { %v1901_v13 = vmul.f32 %v2744_v9, %v1885_v44 }
 0xbed   : > { %v1907_v12 = vmul.f32 %v1906_v8, %v1901_v13 }
 0xbee   : > { %v2746_v14 = vpop.eup %2745 }
 0xbef   : > { %v1902_v15 = vmul.f32 %v2746_v14, %v1886_v48  ;;  %v1913_v16 = vadd.f32 %v1912_v11, %v1907_v12  ;;  %v2074_v12 = vsub.s32 7, %v3344_v1 }
 0xbf1   : > { %v1908_v17 = vmul.f32 %v1906_v8, %v1902_v15  ;;  %v1915_v18 = vmax.f32 %v1913_v16, 0.0  ;;  %v2075_v14 = vrot.slane %v3351_v10, %v2074_v12 }
 0xbf3   : > { %v1914_v19 = vadd.f32 %v1912_v11, %v1908_v17  ;;  %2473 = vmatprep.mubr.msk.f32.mxu1 %vm406_vm0, %v1915_v18  ;;  %v2280_v17 = vld [vmem:[%s3589_s6 + $0x8] ss:$0 sm:$0xff] }
 0xbf5   : > { %v1916_v20 = vmax.f32 %v1914_v19, 0.0 }
 0xbf7   : > { %2474 = vmatmul.mubr.msk.f32.vlgmr.msra.gmra.mrb[10].mxu1 %vm406_vm0, %v1916_v20 }
 0xcca   : > { %v2475_v22 = vpop.f32.mrb[10].mxu1 }
 0xccb   : > { %v2003_v23 = vadd.f32 %v2475_v22, %v1924_v21  ;;  %v1997_v24 = vpop.f32.mrb[11].mxu1 }
 0xccc   : > { %v1998_v25 = vadd.f32 %v1997_v24, %v1924_v21 }
 0xccd   : > { %v2007_v27 = vadd.f32 %v2003_v23, %v3473_v57 }
 0xcce   : > { %v2006_v53 = vadd.f32 %v1998_v25, %v3471_v56 }
 0xccf   : > { %v2011_v28 = vsel %vm406_vm0, %v2007_v27, 0.0 }
 0xcd0   : > { %v2008_v26 = vsel %vm406_vm0, %v2006_v53, 0.0 }
 0xcd1   : > { %2009 = vadd.xlane.f32.xlu0 %v2008_v26 }
 0xcd5   : > { %2012 = vadd.xlane.f32.xlu0 %v2011_v28 }
 0xd5e   : > { %v2010_v29 = vpop.xlane.xlu0 %2009 }
 0xd5f   : > { %v2014_v30 = vmul.f32 0.03125, %v2010_v29 }
 0xd61   : > { %v2016_v32 = vsub.f32 %v2006_v53, %v2014_v30 }
 0xd62   : > { %v2013_v33 = vpop.xlane.xlu0 %2012 }
 0xd63   : > { %v2015_v34 = vmul.f32 0.03125, %v2013_v33  ;;  %v2018_v35 = vmul.f32 %v2016_v32, %v2016_v32 }
 0xd65   : > { %v2017_v36 = vsub.f32 %v2007_v27, %v2015_v34  ;;  %v2020_v37 = vsel %vm406_vm0, %v2018_v35, 0.0 }
 0xd66   : > { %2021 = vadd.xlane.f32.xlu0 %v2020_v37 }
 0xd67   : > { %v2019_v2 = vmul.f32 %v2017_v36, %v2017_v36 }
 0xd69   : > { %v2023_v56 = vsel %vm406_vm0, %v2019_v2, 0.0 }
 0xd6a   : > { %2024 = vadd.xlane.f32.xlu1 %v2023_v56 }
 0xdf3   : > { %v2022_v38 = vpop.xlane.xlu0 %2021 }
 0xdf4   : > { %v2026_v57 = vmul.f32 0.03125, %v2022_v38 }
 0xdf6   : > { %v2028_v31 = vadd.f32 1e-05, %v2026_v57 }
 0xdf7   : > { %v2025_v39 = vpop.xlane.xlu1 %2024 }
 0xdf8   : > { %2747 = vrsqrt.f32 %v2028_v31  ;;  %v2027_v40 = vmul.f32 0.03125, %v2025_v39 }
 0xdfa   : > { %v2029_v49 = vadd.f32 1e-05, %v2027_v40 }
 0xdfc   : > { %2749 = vrsqrt.f32 %v2029_v49 }
 0xe02   : > { %v2748_v43 = vpop.eup %2747 }
 0xe03   : > { %v2032_v44 = vmul.f32 %v2748_v43, %v2016_v32 }
 0xe05   : > { %v2038_v46 = vmul.f32 %v2037_v42, %v2032_v44 }
 0xe06   : > { %v2750_v47 = vpop.eup %2749 }
 0xe07   : > { %v2044_v48 = vadd.f32 %v2043_v45, %v2038_v46  ;;  %v2033_v51 = vmul.f32 %v2750_v47, %v2017_v36 }
 0xe09   : > { %v2046_v50 = vsel %vm406_vm0, %v2044_v48, 0.0  ;;  %v2039_v54 = vmul.f32 %v2037_v42, %v2033_v51 }
 0xe0a   : > { %2047 = vadd.xlane.f32.xlu0 %v2046_v50 }
 0xe0b   : > { %v2045_v55 = vadd.f32 %v2043_v45, %v2039_v54 }
 0xe0d   : > { %v2049_v58 = vsel %vm406_vm0, %v2045_v55, 0.0 }
 0xe0e   : > { %2050 = vadd.xlane.f32.xlu1 %v2049_v58 }
 0xe97   : > { %v2048_v59 = vpop.xlane.xlu0 %2047 }
 0xe98   : > { %v2052_v60 = vmul.f32 0.03125, %v2048_v59 }
 0xe9a   : > { %v2054_v61 = vsub.f32 %v2044_v48, %v2052_v60 }
 0xe9b   : > { %v2051_v52 = vpop.xlane.xlu1 %2050 }
 0xe9c   : > { %v2053_v62 = vmul.f32 0.03125, %v2051_v52  ;;  %v2056_v0 = vmul.f32 %v2054_v61, %v2054_v61 }
 0xe9e   : > { %v2055_v3 = vsub.f32 %v2045_v55, %v2053_v62  ;;  %v2058_v63 = vsel %vm406_vm0, %v2056_v0, 0.0 }
 0xe9f   : > { %2059 = vadd.xlane.f32.xlu0 %v2058_v63 }
 0xea0   : > { %v2057_v4 = vmul.f32 %v2055_v3, %v2055_v3 }
 0xea2   : > { %v2061_v5 = vsel %vm406_vm0, %v2057_v4, 0.0 }
 0xea3   : > { %2062 = vadd.xlane.f32.xlu1 %v2061_v5 }
 0xf2c   : > { %v2060_v6 = vpop.xlane.xlu0 %2059 }
 0xf2d   : > { %v2064_v7 = vmul.f32 0.03125, %v2060_v6 }
 0xf2f   : > { %v2066_v8 = vadd.f32 1e-05, %v2064_v7 }
 0xf30   : > { %v2063_v9 = vpop.xlane.xlu1 %2062 }
 0xf31   : > { %2751 = vrsqrt.f32 %v2066_v8  ;;  %v2065_v13 = vmul.f32 0.03125, %v2063_v9 }
 0xf33   : > { %v2067_v11 = vadd.f32 1e-05, %v2065_v13 }
 0xf35   : > { %2753 = vrsqrt.f32 %v2067_v11 }
 0xf3b   : > { %v2752_v15 = vpop.eup %2751 }
 0xf3c   : > { %v2070_v16 = vmul.f32 %v2752_v15, %v2054_v61 }
 0xf3e   : > { %v2076_v18 = vmul.f32 %v2075_v14, %v2070_v16 }
 0xf3f   : > { %v2754_v19 = vpop.eup %2753 }
 0xf40   : > { %v2082_v20 = vadd.f32 %v2280_v17, %v2076_v18  ;;  %v2071_v21 = vmul.f32 %v2754_v19, %v2055_v3 }
 0xf42   : > { %v2077_v22 = vmul.f32 %v2075_v14, %v2071_v21  ;;  %2084 = vst.msk [vmem:[%s396_s26] sm:$0xff] %vm406_vm0, %v2082_v20 }
 0xf44   : > { %v2083_v1 = vadd.f32 %v2280_v17, %v2077_v22 }
 0xf46   : > { %2085 = vst.msk [vmem:[%s396_s26 + $0x8] sm:$0xff] %vm406_vm0, %v2083_v1 }
 0xf47   : > { %2938 = shalt.err (!%p2935_p8)
}
 0xf48   : > { %s2939_s19 = scalar_lea.hbm %s3536_s15, 256  ;;  %s2943_s25 = scalar_lea.hbm %s3591_s8, 512 }
 0xf49   : > { %p2940_p6 = scmp.ne.s32.totalorder %s3536_s15, %s2939_s19  ;;  %p2944_p3 = scmp.lt.u32.totalorder %s3536_s15, %s3591_s8 }
 0xf4a   : > { %p2945_p5 = scmp.lt.u32.totalorder %s2943_s25, %s2939_s19  ;;  %p2947_p7 = scmp.lt.u32.totalorder %s2939_s19, %s3536_s15 }
 0xf4b   : > { %p2941_p10 = pnand %p2940_p6, %p3616_p4 }
 0xf4c   : > { %p2946_p9 = por %p2945_p5, %p2944_p3 }
 0xf4d   : > { %p2942_p11 = pneg %p2941_p10 }
 0xf4e   : > { %p2948_p12 = por %p2947_p7, %p2946_p9 }
 0xf50   : > { %p2949_p1 = pnand %p2948_p12, %p2942_p11 }
 0xf52   : > { %2952 = shalt.err (!%p2949_p1)
}
 0xf53   : > { %s3026_s22 = smov 128   ;;  %s3027_s12 = smov 8  }
 0xf54   : > { %2576 = dma.vmem_to_hbm [thread:$0]  (%p3616_p4), %s3538_s10, 256, %s3536_s15, %s2087_s11, %s3026_s22, %s3026_s22, %s3027_s12  }
 0xf55 PF: > { %s2115_s17 = sand.u32 1, %s2991_s27   ;;  %p3617_p13 = scmp.ne.s32.totalorder %s3604_s24, 0 }
 0xf56   : > { %p3618_p0 = scmp.ge.s32.totalorder %s3003_s30, 2  ;;  %s2116_s13 = scalar_lea.sflag [#allocation4], %s2115_s17 }
 0xf58   : > { %p2599_p2 = pnand %p3618_p0, %p3617_p13 }
 0xf5a   : > { %2986 = dma.done.wait (!%p2599_p2), %s2116_s13, 256  }
 0xf5b   : > { %2988 = vsyncadd (!%p2599_p2), %s2116_s13, 4294967040  ;;  %p24_p8 = scmp.ge.s32.totalorder %s3246_s23, 4   ;;  %s3619_s27 = smov %s2995_s28 }
 0xf5c   : > { %s3620_s28 = smov %s2999_s29  ;;  %s3621_s29 = smov %s3258_s18 }
 0xf5d   : > { %s3622_s30 = smov %s3246_s23  ;;  %26 = sbr.rel (!%p24_p8) target bundleno = 10 (0xa), region = 117 }
 0xf64   :  { %2121 = vsyncpa [#allocation3], 1 }
 0xf65   :  { %2123 = vsyncpa [#allocation3 + $0x1], 1 }
 0xf66   :  { %2124 = vsyncpa [#allocation6], 1 }
 0xf67   :  { %2125 = vsyncpa [#allocation9], 1 }
 0xf68   :  { %2126 = vsyncpa [#allocation12], 1 }
 0xf69   :  { %2127 = vsyncpa [#allocation4], 1 }
 0xf6a   :  { %2129 = vsyncpa [#allocation4 + $0x1], 1 }

</bundles_post_ra>
